<compile_context>
chip_gen: v7x
topology: tpu7x:2x2x1
jax: 0.10.0
libtpu: 0.0.40
codegen_flags: <defaults>
</compile_context>

<pallas_src>
import functools

import jax
import jax.numpy as jnp
from jax import lax
from jax.experimental import pallas as pl
from jax.experimental.pallas import tpu as pltpu

KERNEL_SIZE = 7               # hard-coded in PatchMixerLayer.Resnet (Conv1d kernel_size=7)
PAD = (KERNEL_SIZE - 1) // 2  # zero padding of the depthwise conv
BN_EPS = 1e-5


# ------------------------------ fused kernel ------------------------------- #

def _backbone_kernel(x_ref, mask_ref, dw_w_ref, dw_b_ref, bn_s_ref, bn_b_ref,
                     pw_w_ref, pw_b_ref, head_w_ref, head_b_ref,
                     o_ref, act_ref):
    """Grid = (batch_tiles, depth).  One PatchMixer layer per depth step.

    Resident activation slab: act_ref (C_pad, TB*L + 2*PAD) f32, zero halo on
    each lane end (written once at d==0 from the pre-padded input slab).
    """
    d = pl.program_id(1)
    Cp, W = act_ref.shape
    NL = W - 2 * PAD                      # payload lane width = TB * L
    TB = o_ref.shape[2]
    L = head_w_ref.shape[1]

    # First depth step of this batch tile: park the (pre-padded) input in VMEM.
    @pl.when(d == 0)
    def _init():
        act_ref[...] = x_ref[...]

    slab = act_ref[...]                   # (Cp, W), single full VMEM load
    dw = dw_w_ref[...]                    # (Cp, K)
    msk = mask_ref[...]                   # (K, NL) 0/1 tap-validity masks

    # --- depthwise Conv1d(k=7, groups=C), zero padding via tap masks ----------
    # 7 static lane-offset slices of the slab; accumulator seeded with tap 0.
    def tap(k):
        t = slab[:, k:k + NL] * dw[:, k:k + 1]
        if k != PAD:                      # center tap never crosses a boundary
            t = t * msk[k:k + 1, :]
        return t

    acc = tap(0)
    for k in range(1, KERNEL_SIZE):       # static unroll, 7 taps
        acc = acc + tap(k)
    conv = acc + dw_b_ref[...]            # dw_b: (Cp, 1)

    # --- ReLU -> BatchNorm (pre-folded affine) -> residual (all f32) ----------
    r = jnp.maximum(conv, 0.0)
    x_mid = slab[:, PAD:PAD + NL]
    z = x_mid + r * bn_s_ref[...] + bn_b_ref[...]

    # --- Conv1d(C, C, k=1) + ReLU: one lane-dense 2-D MXU matmul (bf16 x bf16) -
    pw = jnp.dot(pw_w_ref[...], z.astype(jnp.bfloat16),
                 preferred_element_type=jnp.float32)        # (Cp, NL) f32
    new_act = jnp.maximum(pw + pw_b_ref[...], 0.0)           # pw_b: (Cp, 1)
    act_ref[:, PAD:PAD + NL] = new_act    # halo columns stay zero forever

    # --- last layer: fused head  permute(0,2,1) + Conv1d(patch_len -> 2, k=1) -
    @pl.when(d == pl.num_programs(1) - 1)
    def _head():
        act3 = new_act.reshape(Cp, TB, L)                    # once per batch tile
        head = jnp.einsum('op,nbp->onb', head_w_ref[...], act3,
                          preferred_element_type=jnp.float32)  # (2, Cp, TB)
        o_ref[...] = head + head_b_ref[...][:, :, None]        # head_b: (2, 1)


# ------------------------------ wrapper ------------------------------------- #

@functools.partial(jax.jit, static_argnames=('patch_len', 'stride', 'batch_tile'))
def backbone_forward(x, params, *, patch_len, stride, batch_tile=None):
    """x: (B, seq_len) float32  ->  (B, 2 * ceil(patch_num / 2)) float32."""
    B, seq_len = x.shape

    # unsqueeze(-1).permute(0,2,1); ReplicationPad1d((0, stride));
    # unfold(size=patch_len, step=stride); squeeze(axis=1).
    xrep = jnp.concatenate([x, jnp.repeat(x[:, -1:], stride, axis=1)], axis=1)
    patch_num = (seq_len - patch_len) // stride + 1 + 1
    idx = jnp.arange(patch_num)[:, None] * stride + jnp.arange(patch_len)[None, :]
    patches = xrep[:, idx]                                # (B, C, L)

    C, L = patch_num, patch_len
    Cp = ((C + 7) // 8) * 8                               # pad channels to sublane multiple
    pad_c = Cp - C

    TB = B if batch_tile is None else batch_tile
    assert B % TB == 0, (B, TB)
    nb = B // TB
    NL = TB * L
    W = NL + 2 * PAD

    blocks = params['blocks']
    depth = len(blocks)

    # Stack per-layer weights along a leading depth axis; fold BN into an affine;
    # zero-pad the channel dim so padded channels stay identically zero.
    dw_w = jnp.pad(jnp.stack([b['dw_w'] for b in blocks]),
                   ((0, 0), (0, pad_c), (0, 0)))          # (depth, Cp, K)
    dw_b = jnp.pad(jnp.stack([b['dw_b'] for b in blocks]),
                   ((0, 0), (0, pad_c), (0, 0)))          # (depth, Cp, 1)
    gamma = jnp.stack([b['gamma'] for b in blocks])
    beta = jnp.stack([b['beta'] for b in blocks])
    mean = jnp.stack([b['mean'] for b in blocks])
    var = jnp.stack([b['var'] for b in blocks])
    bn_scale = gamma * lax.rsqrt(var + BN_EPS)
    bn_shift = beta - mean * bn_scale
    bn_scale = jnp.pad(bn_scale, ((0, 0), (0, pad_c), (0, 0)))
    bn_shift = jnp.pad(bn_shift, ((0, 0), (0, pad_c), (0, 0)))
    pw_w = jnp.pad(jnp.stack([b['pw_w'] for b in blocks]),
                   ((0, 0), (0, pad_c), (0, pad_c))).astype(jnp.bfloat16)
    pw_b = jnp.pad(jnp.stack([b['pw_b'] for b in blocks]),
                   ((0, 0), (0, pad_c), (0, 0)))

    # Per-batch-tile 2-D activation slab (Cp, TB*L) with PAD zero halo per end.
    xp = jnp.pad(patches, ((0, 0), (0, pad_c), (0, 0)))   # (B, Cp, L)
    x_t = xp.transpose(1, 0, 2).reshape(Cp, nb, TB, L).transpose(1, 0, 2, 3)
    x_t = x_t.reshape(nb, Cp, NL)
    x_t = jnp.pad(x_t, ((0, 0), (0, 0), (PAD, PAD)))      # (nb, Cp, W)

    # Tap-validity masks (zero padding of the depthwise conv):
    # mask[k, col] = 1 iff 0 <= (col % L) + (k - PAD) < L.  Shared by all steps.
    pos = jnp.arange(NL) % L
    offs = jnp.arange(KERNEL_SIZE) - PAD
    valid = (pos[None, :] + offs[:, None] >= 0) & (pos[None, :] + offs[:, None] < L)
    masks = valid.astype(jnp.float32)                     # (K, NL)

    def per_layer(*tail):
        # block over the stacked-depth axis, selected by the depth grid index.
        return pl.BlockSpec((None,) + tail, lambda b, d: (d,) + (0,) * len(tail))

    out = pl.pallas_call(
        _backbone_kernel,
        out_shape=jax.ShapeDtypeStruct((nb, 2, Cp, TB), jnp.float32),
        grid=(nb, depth),
        in_specs=[
            pl.BlockSpec((None, Cp, W), lambda b, d: (b, 0, 0)),     # x slab (d==0)
            pl.BlockSpec((KERNEL_SIZE, NL), lambda b, d: (0, 0)),    # tap masks
            per_layer(Cp, KERNEL_SIZE),                               # dw_w
            per_layer(Cp, 1),                                         # dw_b
            per_layer(Cp, 1),                                         # bn_scale
            per_layer(Cp, 1),                                         # bn_shift
            per_layer(Cp, Cp),                                        # pw_w (bf16)
            per_layer(Cp, 1),                                         # pw_b
            pl.BlockSpec((2, L), lambda b, d: (0, 0)),                # head_w
            pl.BlockSpec((2, 1), lambda b, d: (0, 0)),                # head_b
        ],
        out_specs=pl.BlockSpec((None, 2, Cp, TB), lambda b, d: (b, 0, 0, 0)),
        scratch_shapes=[pltpu.VMEM((Cp, W), jnp.float32)],            # resident slab
        compiler_params=pltpu.CompilerParams(
            dimension_semantics=("parallel", "arbitrary"),
            vmem_limit_bytes=64 * 1024 * 1024),
    )(x_t, masks, dw_w, dw_b, bn_scale, bn_shift, pw_w, pw_b,
      params['head_w'], params['head_b'])

    # (nb, 2, Cp, TB) -> (B, 2, C);  MaxPool1d(kernel=1, stride=2) == keep every
    # other position; Flatten(start_dim=-2).  Tiny tensor -> wrapper-side glue.
    y = out.transpose(0, 3, 1, 2).reshape(B, 2, Cp)[:, :, :C]
    return y[:, :, ::2].reshape(B, -1)


# ----------------------- deterministic parameter init ---------------------- #

def init_params(key, patch_num, patch_len, depth):
    params = {'blocks': []}
    for _ in range(depth):
        key, k1, k2, k3, k4, k5, k6 = jax.random.split(key, 7)
        blk = {
            # depthwise Conv1d(patch_num, patch_num, 7, groups=patch_num): (C,1,7)->(C,7)
            'dw_w': 0.1 * jax.random.normal(k1, (patch_num, KERNEL_SIZE), jnp.float32),
            'dw_b': 0.1 * jax.random.normal(k2, (patch_num, 1), jnp.float32),
            # BatchNorm1d(patch_num), inference stats
            'gamma': 1.0 + 0.1 * jax.random.normal(k3, (patch_num, 1), jnp.float32),
            'beta': 0.1 * jax.random.normal(k4, (patch_num, 1), jnp.float32),
            'mean': jnp.zeros((patch_num, 1), jnp.float32),
            'var': jnp.ones((patch_num, 1), jnp.float32),
            # Conv1d(patch_num, patch_num, 1): (A, C, 1) -> (A, C)
            'pw_w': 0.1 * jax.random.normal(k5, (patch_num, patch_num), jnp.float32),
            'pw_b': 0.1 * jax.random.normal(k6, (patch_num, 1), jnp.float32),
        }
        params['blocks'].append(blk)
    key, k1, k2 = jax.random.split(key, 3)
    # head Conv: Conv1d(patch_size, 2, 1): (2, patch_size, 1) -> (2, patch_size)
    params['head_w'] = 0.1 * jax.random.normal(k1, (2, patch_len), jnp.float32)
    params['head_b'] = 0.1 * jax.random.normal(k2, (2, 1), jnp.float32)
    return params


# ---------------------------- pure-JAX reference ---------------------------- #

def _ref_block(x, p):
    B, C, L = x.shape
    xp = jnp.pad(x, ((0, 0), (0, 0), (PAD, PAD)))
    conv = jnp.zeros_like(x)
    for k in range(KERNEL_SIZE):
        conv = conv + xp[:, :, k:k + L] * p['dw_w'][:, k][None, :, None]
    conv = conv + p['dw_b'][None]
    r = jnp.maximum(conv, 0.0)
    bn = (r - p['mean'][None]) / jnp.sqrt(p['var'][None] + BN_EPS) * p['gamma'][None] + p['beta'][None]
    z = x + bn
    # pointwise conv with bf16 operands / f32 accumulation (matches kernel MXU path)
    pw = jnp.einsum('ac,bcl->bal', p['pw_w'].astype(jnp.bfloat16),
                    z.astype(jnp.bfloat16),
                    preferred_element_type=jnp.float32) + p['pw_b'][None]
    return jnp.maximum(pw, 0.0)


def _ref_forward(x, params, *, patch_len, stride):
    B, S = x.shape
    xpad = jnp.concatenate([x, jnp.repeat(x[:, -1:], stride, axis=1)], axis=1)
    patch_num = (S - patch_len) // stride + 1 + 1
    idx = jnp.arange(patch_num)[:, None] * stride + jnp.arange(patch_len)[None, :]
    xp = xpad[:, idx]
    for blk in params['blocks']:
        xp = _ref_block(xp, blk)
    y = jnp.einsum('op,bnp->bon', params['head_w'], xp) + params['head_b'][None]
    y = y[:, :, ::2]
    return y.reshape(B, -1)


# ---------------------------------- main ------------------------------------ #

if __name__ == "__main__":
    # Small Backbone config (mixer_kernel_size=7 -> padding=3 keeps lengths).
    B, seq_len, patch_len, stride, e_layers = 4, 16, 4, 4, 2
    patch_num = (seq_len - patch_len) // stride + 1 + 1   # 5

    key = jax.random.PRNGKey(0)
    key, xk = jax.random.split(key)
    x = jax.random.normal(xk, (B, seq_len), jnp.float32)   # Backbone input: (B, seq_len)
    params = init_params(key, patch_num, patch_len, e_layers)

    out = backbone_forward(x, params, patch_len=patch_len, stride=stride,
                           batch_tile=2)                   # 2 batch tiles -> exercises parallel axis
    out = jax.block_until_ready(out)

    ref = _ref_forward(x, params, patch_len=patch_len, stride=stride)
    assert out.shape == (B, 2 * ((patch_num - 1) // 2 + 1)), out.shape
    assert jnp.allclose(out, ref, atol=2e-4, rtol=2e-4), "mismatch vs reference"

    print("KERNEL_OK")
</pallas_src>

<mosaic_0001>
module attributes {stable_mosaic.version = 11 : i64} {
  func.func @_backbone_kernel(%arg0: i32, %arg1: i32, %arg2: memref<1x8x14xf32, #tpu.memory_space<vmem>>, %arg3: memref<7x8xf32, #tpu.memory_space<vmem>>, %arg4: memref<1x8x7xf32, #tpu.memory_space<vmem>>, %arg5: memref<1x8x1xf32, #tpu.memory_space<vmem>>, %arg6: memref<1x8x1xf32, #tpu.memory_space<vmem>>, %arg7: memref<1x8x1xf32, #tpu.memory_space<vmem>>, %arg8: memref<1x8x8xbf16, #tpu.memory_space<vmem>>, %arg9: memref<1x8x1xf32, #tpu.memory_space<vmem>>, %arg10: memref<2x4xf32, #tpu.memory_space<vmem>>, %arg11: memref<2x1xf32, #tpu.memory_space<vmem>>, %arg12: memref<1x2x8x2xf32, #tpu.memory_space<vmem>>, %arg13: memref<8x14xf32, #tpu.memory_space<vmem>>) attributes {dimension_semantics = [#tpu.dimension_semantics<parallel>, #tpu.dimension_semantics<arbitrary>], iteration_bounds = array<i64: 2, 2>, scalar_prefetch = 0 : i64, scratch_operands = 1 : i64, tpu.core_type = #tpu.core_type<tc>, window_params = [{transform_indices = @transform_0, window_bounds = array<i64: 1, 8, 14>}, {pipeline_mode = #tpu.pipeline_mode<synchronous>, transform_indices = @transform_1, window_bounds = array<i64: 7, 8>}, {transform_indices = @transform_2, window_bounds = array<i64: 1, 8, 7>}, {transform_indices = @transform_3, window_bounds = array<i64: 1, 8, 1>}, {transform_indices = @transform_4, window_bounds = array<i64: 1, 8, 1>}, {transform_indices = @transform_5, window_bounds = array<i64: 1, 8, 1>}, {transform_indices = @transform_6, window_bounds = array<i64: 1, 8, 8>}, {transform_indices = @transform_7, window_bounds = array<i64: 1, 8, 1>}, {pipeline_mode = #tpu.pipeline_mode<synchronous>, transform_indices = @transform_8, window_bounds = array<i64: 2, 4>}, {pipeline_mode = #tpu.pipeline_mode<synchronous>, transform_indices = @transform_9, window_bounds = array<i64: 2, 1>}, {transform_indices = @transform_10, window_bounds = array<i64: 1, 2, 8, 2>}]} {
    %c0_i32 = arith.constant 0 : i32
    %0 = arith.cmpi eq, %arg1, %c0_i32 : i32
    %1 = arith.extui %0 : i1 to i32
    %c0_i32_0 = arith.constant 0 : i32
    %2 = arith.cmpi ne, %1, %c0_i32_0 : i32
    scf.if %2 {
      %c0_26 = arith.constant 0 : index
      %c0_27 = arith.constant 0 : index
      %c0_28 = arith.constant 0 : index
      %89 = vector.load %arg2[%c0_26, %c0_27, %c0_28] : memref<1x8x14xf32, #tpu.memory_space<vmem>>, vector<1x8x14xf32>
      %90 = vector.shape_cast %89 : vector<1x8x14xf32> to vector<8x14xf32>
      %c0_29 = arith.constant 0 : index
      %c0_30 = arith.constant 0 : index
      %91 = vector.load %arg13[%c0_29, %c0_30] : memref<8x14xf32, #tpu.memory_space<vmem>>, vector<8x14xf32>
      tpu.vector_store %arg13[%c0_29, %c0_30], %90 {strides = array<i32>} : memref<8x14xf32, #tpu.memory_space<vmem>>, vector<8x14xf32>,
    } else {
    }
    %c0 = arith.constant 0 : index
    %c0_1 = arith.constant 0 : index
    %3 = vector.load %arg13[%c0, %c0_1] : memref<8x14xf32, #tpu.memory_space<vmem>>, vector<8x14xf32>
    %c0_2 = arith.constant 0 : index
    %c0_3 = arith.constant 0 : index
    %c0_4 = arith.constant 0 : index
    %4 = vector.load %arg4[%c0_2, %c0_3, %c0_4] : memref<1x8x7xf32, #tpu.memory_space<vmem>>, vector<1x8x7xf32>
    %5 = vector.shape_cast %4 : vector<1x8x7xf32> to vector<8x7xf32>
    %c0_5 = arith.constant 0 : index
    %c0_6 = arith.constant 0 : index
    %6 = vector.load %arg3[%c0_5, %c0_6] : memref<7x8xf32, #tpu.memory_space<vmem>>, vector<7x8xf32>
    %7 = vector.extract_strided_slice %3 {offsets = [0, 0], sizes = [8, 8], strides = [1, 1]} : vector<8x14xf32> to vector<8x8xf32>
    %8 = vector.extract_strided_slice %5 {offsets = [0, 0], sizes = [8, 1], strides = [1, 1]} : vector<8x7xf32> to vector<8x1xf32>
    %9 = vector.broadcast %8 : vector<8x1xf32> to vector<8x8xf32>
    %10 = arith.mulf %7, %9 : vector<8x8xf32>
    %11 = vector.extract_strided_slice %6 {offsets = [0, 0], sizes = [1, 8], strides = [1, 1]} : vector<7x8xf32> to vector<1x8xf32>
    %12 = vector.broadcast %11 : vector<1x8xf32> to vector<8x8xf32>
    %13 = arith.mulf %10, %12 : vector<8x8xf32>
    %14 = vector.extract_strided_slice %3 {offsets = [0, 1], sizes = [8, 8], strides = [1, 1]} : vector<8x14xf32> to vector<8x8xf32>
    %15 = vector.extract_strided_slice %5 {offsets = [0, 1], sizes = [8, 1], strides = [1, 1]} : vector<8x7xf32> to vector<8x1xf32>
    %16 = vector.broadcast %15 : vector<8x1xf32> to vector<8x8xf32>
    %17 = arith.mulf %14, %16 : vector<8x8xf32>
    %18 = vector.extract_strided_slice %6 {offsets = [1, 0], sizes = [1, 8], strides = [1, 1]} : vector<7x8xf32> to vector<1x8xf32>
    %19 = vector.broadcast %18 : vector<1x8xf32> to vector<8x8xf32>
    %20 = arith.mulf %17, %19 : vector<8x8xf32>
    %21 = arith.addf %13, %20 : vector<8x8xf32>
    %22 = vector.extract_strided_slice %3 {offsets = [0, 2], sizes = [8, 8], strides = [1, 1]} : vector<8x14xf32> to vector<8x8xf32>
    %23 = vector.extract_strided_slice %5 {offsets = [0, 2], sizes = [8, 1], strides = [1, 1]} : vector<8x7xf32> to vector<8x1xf32>
    %24 = vector.broadcast %23 : vector<8x1xf32> to vector<8x8xf32>
    %25 = arith.mulf %22, %24 : vector<8x8xf32>
    %26 = vector.extract_strided_slice %6 {offsets = [2, 0], sizes = [1, 8], strides = [1, 1]} : vector<7x8xf32> to vector<1x8xf32>
    %27 = vector.broadcast %26 : vector<1x8xf32> to vector<8x8xf32>
    %28 = arith.mulf %25, %27 : vector<8x8xf32>
    %29 = arith.addf %21, %28 : vector<8x8xf32>
    %30 = vector.extract_strided_slice %3 {offsets = [0, 3], sizes = [8, 8], strides = [1, 1]} : vector<8x14xf32> to vector<8x8xf32>
    %31 = vector.extract_strided_slice %5 {offsets = [0, 3], sizes = [8, 1], strides = [1, 1]} : vector<8x7xf32> to vector<8x1xf32>
    %32 = vector.broadcast %31 : vector<8x1xf32> to vector<8x8xf32>
    %33 = arith.mulf %30, %32 : vector<8x8xf32>
    %34 = arith.addf %29, %33 : vector<8x8xf32>
    %35 = vector.extract_strided_slice %3 {offsets = [0, 4], sizes = [8, 8], strides = [1, 1]} : vector<8x14xf32> to vector<8x8xf32>
    %36 = vector.extract_strided_slice %5 {offsets = [0, 4], sizes = [8, 1], strides = [1, 1]} : vector<8x7xf32> to vector<8x1xf32>
    %37 = vector.broadcast %36 : vector<8x1xf32> to vector<8x8xf32>
    %38 = arith.mulf %35, %37 : vector<8x8xf32>
    %39 = vector.extract_strided_slice %6 {offsets = [4, 0], sizes = [1, 8], strides = [1, 1]} : vector<7x8xf32> to vector<1x8xf32>
    %40 = vector.broadcast %39 : vector<1x8xf32> to vector<8x8xf32>
    %41 = arith.mulf %38, %40 : vector<8x8xf32>
    %42 = arith.addf %34, %41 : vector<8x8xf32>
    %43 = vector.extract_strided_slice %3 {offsets = [0, 5], sizes = [8, 8], strides = [1, 1]} : vector<8x14xf32> to vector<8x8xf32>
    %44 = vector.extract_strided_slice %5 {offsets = [0, 5], sizes = [8, 1], strides = [1, 1]} : vector<8x7xf32> to vector<8x1xf32>
    %45 = vector.broadcast %44 : vector<8x1xf32> to vector<8x8xf32>
    %46 = arith.mulf %43, %45 : vector<8x8xf32>
    %47 = vector.extract_strided_slice %6 {offsets = [5, 0], sizes = [1, 8], strides = [1, 1]} : vector<7x8xf32> to vector<1x8xf32>
    %48 = vector.broadcast %47 : vector<1x8xf32> to vector<8x8xf32>
    %49 = arith.mulf %46, %48 : vector<8x8xf32>
    %50 = arith.addf %42, %49 : vector<8x8xf32>
    %51 = vector.extract_strided_slice %3 {offsets = [0, 6], sizes = [8, 8], strides = [1, 1]} : vector<8x14xf32> to vector<8x8xf32>
    %52 = vector.extract_strided_slice %5 {offsets = [0, 6], sizes = [8, 1], strides = [1, 1]} : vector<8x7xf32> to vector<8x1xf32>
    %53 = vector.broadcast %52 : vector<8x1xf32> to vector<8x8xf32>
    %54 = arith.mulf %51, %53 : vector<8x8xf32>
    %55 = vector.extract_strided_slice %6 {offsets = [6, 0], sizes = [1, 8], strides = [1, 1]} : vector<7x8xf32> to vector<1x8xf32>
    %56 = vector.broadcast %55 : vector<1x8xf32> to vector<8x8xf32>
    %57 = arith.mulf %54, %56 : vector<8x8xf32>
    %58 = arith.addf %50, %57 : vector<8x8xf32>
    %c0_7 = arith.constant 0 : index
    %c0_8 = arith.constant 0 : index
    %c0_9 = arith.constant 0 : index
    %59 = vector.load %arg5[%c0_7, %c0_8, %c0_9] : memref<1x8x1xf32, #tpu.memory_space<vmem>>, vector<1x8x1xf32>
    %60 = vector.shape_cast %59 : vector<1x8x1xf32> to vector<8x1xf32>
    %61 = vector.broadcast %60 : vector<8x1xf32> to vector<8x8xf32>
    %62 = arith.addf %58, %61 : vector<8x8xf32>
    %cst = arith.constant 0.000000e+00 : f32
    %63 = vector.broadcast %cst : f32 to vector<8x8xf32>
    %64 = arith.maximumf %62, %63 : vector<8x8xf32>
    %65 = vector.extract_strided_slice %3 {offsets = [0, 3], sizes = [8, 8], strides = [1, 1]} : vector<8x14xf32> to vector<8x8xf32>
    %c0_10 = arith.constant 0 : index
    %c0_11 = arith.constant 0 : index
    %c0_12 = arith.constant 0 : index
    %66 = vector.load %arg6[%c0_10, %c0_11, %c0_12] : memref<1x8x1xf32, #tpu.memory_space<vmem>>, vector<1x8x1xf32>
    %67 = vector.shape_cast %66 : vector<1x8x1xf32> to vector<8x1xf32>
    %68 = vector.broadcast %67 : vector<8x1xf32> to vector<8x8xf32>
    %69 = arith.mulf %64, %68 : vector<8x8xf32>
    %70 = arith.addf %65, %69 : vector<8x8xf32>
    %c0_13 = arith.constant 0 : index
    %c0_14 = arith.constant 0 : index
    %c0_15 = arith.constant 0 : index
    %71 = vector.load %arg7[%c0_13, %c0_14, %c0_15] : memref<1x8x1xf32, #tpu.memory_space<vmem>>, vector<1x8x1xf32>
    %72 = vector.shape_cast %71 : vector<1x8x1xf32> to vector<8x1xf32>
    %73 = vector.broadcast %72 : vector<8x1xf32> to vector<8x8xf32>
    %74 = arith.addf %70, %73 : vector<8x8xf32>
    %c0_16 = arith.constant 0 : index
    %c0_17 = arith.constant 0 : index
    %c0_18 = arith.constant 0 : index
    %75 = vector.load %arg8[%c0_16, %c0_17, %c0_18] : memref<1x8x8xbf16, #tpu.memory_space<vmem>>, vector<1x8x8xbf16>
    %76 = vector.shape_cast %75 : vector<1x8x8xbf16> to vector<8x8xbf16>
    %77 = arith.truncf %74 : vector<8x8xf32> to vector<8x8xbf16>
    %cst_19 = arith.constant dense<0.000000e+00> : vector<8x8xf32>
    %78 = tpu.matmul %76, %77, %cst_19 {dimension_numbers = #tpu.dot_dimension_numbers<[1], [0], [0], [1], [0, 0, 1, 1], [], []>} : vector<8x8xbf16>, vector<8x8xbf16>, vector<8x8xf32> -> vector<8x8xf32>
    %c0_20 = arith.constant 0 : index
    %c0_21 = arith.constant 0 : index
    %c0_22 = arith.constant 0 : index
    %79 = vector.load %arg9[%c0_20, %c0_21, %c0_22] : memref<1x8x1xf32, #tpu.memory_space<vmem>>, vector<1x8x1xf32>
    %80 = vector.shape_cast %79 : vector<1x8x1xf32> to vector<8x1xf32>
    %81 = vector.broadcast %80 : vector<8x1xf32> to vector<8x8xf32>
    %82 = arith.addf %78, %81 : vector<8x8xf32>
    %cst_23 = arith.constant 0.000000e+00 : f32
    %83 = vector.broadcast %cst_23 : f32 to vector<8x8xf32>
    %84 = arith.maximumf %82, %83 : vector<8x8xf32>
    %c0_24 = arith.constant 0 : index
    %c3 = arith.constant 3 : index
    %85 = vector.load %arg13[%c0_24, %c3] : memref<8x14xf32, #tpu.memory_space<vmem>>, vector<8x8xf32>
    tpu.vector_store %arg13[%c0_24, %c3], %84 {strides = array<i32>} : memref<8x14xf32, #tpu.memory_space<vmem>>, vector<8x8xf32>,
    %c1_i32 = arith.constant 1 : i32
    %86 = arith.cmpi eq, %arg1, %c1_i32 : i32
    %87 = arith.extui %86 : i1 to i32
    %c0_i32_25 = arith.constant 0 : i32
    %88 = arith.cmpi ne, %87, %c0_i32_25 : i32
    scf.if %88 {
      %89 = vector.shape_cast %84 : vector<8x8xf32> to vector<8x2x4xf32>
      %c0_26 = arith.constant 0 : index
      %c0_27 = arith.constant 0 : index
      %90 = vector.load %arg10[%c0_26, %c0_27] : memref<2x4xf32, #tpu.memory_space<vmem>>, vector<2x4xf32>
      "tpu.trace_start"() <{level = 10 : i32, message = "op,nbp->onb"}> : () -> ()
      %cst_28 = arith.constant dense<0.000000e+00> : vector<2x8x2xf32>
      %91 = tpu.matmul %90, %89, %cst_28 {dimension_numbers = #tpu.dot_dimension_numbers<[1], [2], [0], [0, 1], [0, 0, 1, 0, 1, 1], [], []>} : vector<2x4xf32>, vector<8x2x4xf32>, vector<2x8x2xf32> -> vector<2x8x2xf32>
      "tpu.trace_stop"() : () -> ()
      %c0_29 = arith.constant 0 : index
      %c0_30 = arith.constant 0 : index
      %92 = vector.load %arg11[%c0_29, %c0_30] : memref<2x1xf32, #tpu.memory_space<vmem>>, vector<2x1xf32>
      %93 = vector.shape_cast %92 : vector<2x1xf32> to vector<2x1x1xf32>
      %94 = vector.broadcast %93 : vector<2x1x1xf32> to vector<2x8x2xf32>
      %95 = arith.addf %91, %94 : vector<2x8x2xf32>
      %c0_31 = arith.constant 0 : index
      %c0_32 = arith.constant 0 : index
      %c0_33 = arith.constant 0 : index
      %c0_34 = arith.constant 0 : index
      %96 = vector.load %arg12[%c0_31, %c0_32, %c0_33, %c0_34] : memref<1x2x8x2xf32, #tpu.memory_space<vmem>>, vector<1x2x8x2xf32>
      %97 = vector.shape_cast %96 : vector<1x2x8x2xf32> to vector<2x8x2xf32>
      %98 = vector.shape_cast %95 : vector<2x8x2xf32> to vector<1x2x8x2xf32>
      tpu.vector_store %arg12[%c0_31, %c0_32, %c0_33, %c0_34], %98 {strides = array<i32>} : memref<1x2x8x2xf32, #tpu.memory_space<vmem>>, vector<1x2x8x2xf32>,
    } else {
    }
    return
  }
  func.func @transform_0(%arg0: i32, %arg1: i32) -> (i32, i32, i32) {
    %c0_i32 = arith.constant 0 : i32
    %c0_i32_0 = arith.constant 0 : i32
    %c0_i32_1 = arith.constant 0 : i32
    return %arg0, %c0_i32, %c0_i32_0 : i32, i32, i32
  }
  func.func @transform_1(%arg0: i32, %arg1: i32) -> (i32, i32) {
    %c0_i32 = arith.constant 0 : i32
    %c0_i32_0 = arith.constant 0 : i32
    %c0_i32_1 = arith.constant 0 : i32
    return %c0_i32, %c0_i32_0 : i32, i32
  }
  func.func @transform_2(%arg0: i32, %arg1: i32) -> (i32, i32, i32) {
    %c0_i32 = arith.constant 0 : i32
    %c0_i32_0 = arith.constant 0 : i32
    %c0_i32_1 = arith.constant 0 : i32
    return %arg1, %c0_i32, %c0_i32_0 : i32, i32, i32
  }
  func.func @transform_3(%arg0: i32, %arg1: i32) -> (i32, i32, i32) {
    %c0_i32 = arith.constant 0 : i32
    %c0_i32_0 = arith.constant 0 : i32
    %c0_i32_1 = arith.constant 0 : i32
    return %arg1, %c0_i32, %c0_i32_0 : i32, i32, i32
  }
  func.func @transform_4(%arg0: i32, %arg1: i32) -> (i32, i32, i32) {
    %c0_i32 = arith.constant 0 : i32
    %c0_i32_0 = arith.constant 0 : i32
    %c0_i32_1 = arith.constant 0 : i32
    return %arg1, %c0_i32, %c0_i32_0 : i32, i32, i32
  }
  func.func @transform_5(%arg0: i32, %arg1: i32) -> (i32, i32, i32) {
    %c0_i32 = arith.constant 0 : i32
    %c0_i32_0 = arith.constant 0 : i32
    %c0_i32_1 = arith.constant 0 : i32
    return %arg1, %c0_i32, %c0_i32_0 : i32, i32, i32
  }
  func.func @transform_6(%arg0: i32, %arg1: i32) -> (i32, i32, i32) {
    %c0_i32 = arith.constant 0 : i32
    %c0_i32_0 = arith.constant 0 : i32
    %c0_i32_1 = arith.constant 0 : i32
    return %arg1, %c0_i32, %c0_i32_0 : i32, i32, i32
  }
  func.func @transform_7(%arg0: i32, %arg1: i32) -> (i32, i32, i32) {
    %c0_i32 = arith.constant 0 : i32
    %c0_i32_0 = arith.constant 0 : i32
    %c0_i32_1 = arith.constant 0 : i32
    return %arg1, %c0_i32, %c0_i32_0 : i32, i32, i32
  }
  func.func @transform_8(%arg0: i32, %arg1: i32) -> (i32, i32) {
    %c0_i32 = arith.constant 0 : i32
    %c0_i32_0 = arith.constant 0 : i32
    %c0_i32_1 = arith.constant 0 : i32
    return %c0_i32, %c0_i32_0 : i32, i32
  }
  func.func @transform_9(%arg0: i32, %arg1: i32) -> (i32, i32) {
    %c0_i32 = arith.constant 0 : i32
    %c0_i32_0 = arith.constant 0 : i32
    %c0_i32_1 = arith.constant 0 : i32
    return %c0_i32, %c0_i32_0 : i32, i32
  }
  func.func @transform_10(%arg0: i32, %arg1: i32) -> (i32, i32, i32, i32) {
    %c0_i32 = arith.constant 0 : i32
    %c0_i32_0 = arith.constant 0 : i32
    %c0_i32_1 = arith.constant 0 : i32
    %c0_i32_2 = arith.constant 0 : i32
    return %arg0, %c0_i32, %c0_i32_0, %c0_i32_1 : i32, i32, i32, i32
  }
}

</mosaic_0001>

<bundles_post_ra>
// kernel: backbone_forward.1
= control target key start
LH: loop header
LB: loop body
LE: loop exit
PB: predicated region body
PF: predicated region fallthrough
CT: control target
= control target key end

     0   :  { %s2989_s0 = inlined_call_operand.hbm [shape: f32[2,8,14], index: 0, kind: input, shape index: {}]   ;;  %s2990_s1 = inlined_call_operand.hbm [shape: f32[7,8], index: 1, kind: input, shape index: {}]   ;;  %s2991_s2 = inlined_call_operand.hbm [shape: f32[2,8,7], index: 2, kind: input, shape index: {}]   ;;  %s2992_s3 = inlined_call_operand.hbm [shape: f32[2,8,1], index: 3, kind: input, shape index: {}]   ;;  %s2993_s4 = inlined_call_operand.hbm [shape: f32[2,8,1], index: 4, kind: input, shape index: {}]   ;;  %s2994_s5 = inlined_call_operand.hbm [shape: f32[2,8,1], index: 5, kind: input, shape index: {}]   ;;  %s2995_s6 = inlined_call_operand.hbm [shape: bf16[2,8,8], index: 6, kind: input, shape index: {}]   ;;  %s2996_s7 = inlined_call_operand.hbm [shape: f32[2,8,1], index: 7, kind: input, shape index: {}]   ;;  %s2997_s8 = inlined_call_operand.hbm [shape: f32[2,4], index: 8, kind: input, shape index: {}]   ;;  %s2998_s9 = inlined_call_operand.hbm [shape: f32[2,1], index: 9, kind: input, shape index: {}]   ;;  %s2999_s10 = inlined_call_operand.hbm [shape: f32[2,2,8,2], index: 10, kind: output, shape index: {}]  }
   0x1   :  { %3028 = sst [smem:[#allocation37_spill]] %s2989_s0 }
   0x2   :  { %3029 = sst [smem:[#allocation38_spill]] %s2990_s1 }
   0x3   :  { %3030 = sst [smem:[#allocation39_spill]] %s2991_s2 }
   0x4   :  { %3031 = sst [smem:[#allocation40_spill]] %s2992_s3 }
   0x5   :  { %3032 = sst [smem:[#allocation41_spill]] %s2993_s4 }
   0x6   :  { %3033 = sst [smem:[#allocation42_spill]] %s2994_s5 }
   0x7   :  { %3034 = sst [smem:[#allocation43_spill]] %s2995_s6 }
   0x8   :  { %3035 = sst [smem:[#allocation44_spill]] %s2996_s7 }
   0x9   :  { %3036 = sst [smem:[#allocation45_spill]] %s2997_s8 }
   0xa   :  { %3037 = sst [smem:[#allocation46_spill]] %s2998_s9 }
   0xb   :  { %3038 = sst [smem:[#allocation47_spill]] %s2999_s10 }
   0xc   :  { %15 = vsyncpa [#allocation4], 0 }
   0xd   :  { %17 = vsyncpa [#allocation4 + $0x1], 0 }
   0xe   :  { %18 = vsyncpa [#allocation7], 0 }
   0xf   :  { %19 = vsyncpa [#allocation16], 0 }
  0x10   :  { %20 = vsyncpa [#allocation5], 0 }
  0x11   :  { %22 = vsyncpa [#allocation5 + $0x1], 0  ;;  %s2339_s13 = smov 0   ;;  %s2341_s14 = smov 0  }
  0x12   :  { %s2343_s15 = smov 0   ;;  %s2345_s16 = smov 0  }
  0x13   :  { %s2347_s17 = smov 0   ;;  %s2349_s18 = smov 0  }
  0x14   :  { %s2351_s19 = smov 0   ;;  %s2353_s20 = smov 0  }
  0x15   :  { %s2355_s21 = smov 0   ;;  %s2357_s22 = smov 0  }
  0x16   :  { %s2359_s23 = smov 0  }
  0x17 LB: > { %3039 = sst [smem:[#allocation24_spill]] %s2195_s15  ;;  %s2395_s24 = sadd.s32 4294967295, %s2227_s23   ;;  %s2227_s23 = sphi %s2359_s23, %s28_s23   ;;  %s2223_s22 = sphi %s2357_s22, %s3112_s22   ;;  %s2219_s21 = sphi %s2355_s21, %s3111_s21   ;;  %s2215_s20 = sphi %s2353_s20, %s3110_s20   ;;  %s2211_s19 = sphi %s2351_s19, %s3109_s19   ;;  %s2207_s18 = sphi %s2349_s18, %s3117_s18   ;;  %s2203_s17 = sphi %s2347_s17, %s3116_s17   ;;  %s2199_s16 = sphi %s2345_s16, %s3115_s16   ;;  %s2195_s15 = sphi %s2343_s15, %s3106_s15   ;;  %s2191_s14 = sphi %s2341_s14, %s3114_s14   ;;  %s2187_s13 = sphi %s2339_s13, %s3113_s13  }
  0x18   : > { %3040 = sst [smem:[#allocation25_spill]] %s2199_s16  ;;  %s1511_s25 = sadd.s32 4294967294, %s2227_s23  }
  0x19   : > { %3041 = sst [smem:[#allocation26_spill]] %s2207_s18  ;;  %s37_s26 = sadd.s32 1, %s2219_s21 }
  0x1a   : > { %3042 = sst [smem:[#allocation27_spill]] %s2211_s19  ;;  %s40_s27 = sadd.s32 1, %s2223_s22 }
  0x1b   : > { %3043 = sst [smem:[#allocation28_spill]] %s2215_s20  ;;  %p38_p0 = scmp.ge.s32.totalorder %s37_s26, 2 }
  0x1c   : > { %3044 = sst [smem:[#allocation29_spill]] %s2219_s21  ;;  %s47_s28 = sadd.s32 1, %s2207_s18 }
  0x1d   : > { %3045 = sst [smem:[#allocation30_spill]] %s2223_s22  ;;  %p54_p1 = scmp.ne.s32.totalorder %s2207_s18, %s2203_s17 }
  0x1e   : > { %p55_p2 = scmp.eq.s32.totalorder %s2227_s23, 0  ;;  %s3119_s26 = smov (%p38_p0, %s37_s26), 0 }
  0x1f   : > { %3046 = sst [smem:[#allocation31_spill]] %s3119_s26  ;;  %s3121_s27 = smov (!%p38_p0, %s40_s27), %s2223_s22 }
  0x20   : > { %p2412_p3 = por %p55_p2, %p54_p1  ;;  %p3009_p4 = scmp.ne.s32.totalorder %s2203_s17, %s2199_s16 }
  0x21   : > { %p42_p5 = scmp.ge.s32.totalorder %s3121_s27, 2  ;;  %s91_s30 = ssub.s32 %s2219_s21, %s3119_s26 }
  0x22   : > { %p92_p6 = scmp.eq.s32.totalorder %s91_s30, 0  ;;  %s94_s11 = sadd.s32 1, %s2195_s15 }
  0x23   : > { %s3123_s27 = smov (%p42_p5, %s3121_s27), 0  ;;  %p101_p7 = scmp.ne.s32.totalorder %s2195_s15, %s2191_s14 }
  0x24   : > { %3048 = sst [smem:[#allocation32_spill]] %s3123_s27  ;;  %s44_s10 = ssub.s32 %s2223_s22, %s3123_s27 }
  0x25   : > { %s2424_s12 = scalar_select %p92_p6, %s2195_s15, %s94_s11  }
  0x26   : > { %p45_p8 = scmp.eq.s32.totalorder %s44_s10, 0  ;;  %p2434_p10 = por %p101_p7, %p55_p2 }
  0x27   : > { %3049 = sst [smem:[#allocation33_spill]] %s2424_s12  ;;  %p303_p11 = scmp.eq.s32.totalorder %s2395_s24, 3 }
  0x28   : > { %s2440_s30 = scalar_select %p45_p8, %s2207_s18, %s47_s28  }
  0x29   : > { %p2445_p12 = por %p303_p11, %p54_p1  ;;  %p309_p13 = scmp.eq.s32.totalorder %s1511_s25, 3 }
  0x2a   : > { %3051 = sst [smem:[#allocation34_spill]] %s2440_s30  ;;  %p1645_p2 = scmp.lt.s32.totalorder %s2227_s23, 4 }
  0x2b   : > { %s3052_s11 = scalar_select %p2445_p12, 1, 0 }
  0x2c   : > { %p2452_p0 = por %p309_p13, %p3009_p4  ;;  %s362_s27 = sand.u32 1, %s2227_s23  }
  0x2d   : > { %3053 = sst [smem:[#allocation35_spill]] %s3052_s11  ;;  %s364_s26 = sand.u32 1, %s2207_s18  }
  0x2e   : > { %s3054_s10 = scalar_select %p2452_p0, 1, 0 }
  0x2f   : > { %s1517_s12 = sshll.u32 %s364_s26, 3  ;;  %s1518_s19 = sshll.u32 %s2223_s22, 7 }
  0x30   : > { %3055 = sst [smem:[#allocation36_spill]] %s3054_s10  ;;  %s3056_s0 = sld [smem:[#allocation37_spill]] }
  0x31   : > { %s366_s11 = scalar_lea.vmem [#allocation3], %s1517_s12  ;;  %p2469_p1 = pnand %p1645_p2, %p2412_p3 }
  0x32   : > { %s373_s25 = sshll.u32 %s366_s11, 4  ;;  %p2475_p5 = pnand %p1645_p2, %p2434_p10  ;;  %s2465_s25 = int_to_ptr.vmem [resolvable:$true] %s373_s25 }
  0x33   : > { %s2484_s12 = scalar_lea.sflag [#allocation4], %s362_s27  ;;  %p1797_p3 = pneg %p2469_p1 }
  0x34   : > { %s3058_s9 = scalar_select %p2475_p5, 1, 0 }
  0x36   : > { %s2463_s30 = scalar_lea.hbm %s3056_s0, %s1518_s19  ;;  %s3011_s19 = sand.u32 1, %s2195_s15  }
  0x37   : > { %s2482_s26 = sshll.u32 %s3011_s19, 3  ;;  %s1795_s11 = scalar_lea.hbm %s2463_s30, 128 }
  0x38   : > { %p1796_p6 = scmp.ne.s32.totalorder %s2463_s30, %s1795_s11  ;;  %s1800_s28 = scalar_lea.hbm %s3056_s0, 256 }
  0x39   : > { %p1801_p10 = scmp.lt.u32.totalorder %s2463_s30, %s3056_s0  ;;  %p1802_p11 = scmp.lt.u32.totalorder %s1800_s28, %s1795_s11 }
  0x3a   : > { %p1798_p7 = pnand %p1797_p3, %p1796_p6  ;;  %p1804_p2 = scmp.lt.u32.totalorder %s1795_s11, %s2463_s30 }
  0x3b   : > { %p1803_p13 = por %p1802_p11, %p1801_p10 }
  0x3c   : > { %p1799_p8 = pneg %p1798_p7 }
  0x3d   : > { %p1805_p9 = por %p1804_p2, %p1803_p13 }
  0x3f   : > { %p1806_p4 = pnand %p1805_p9, %p1799_p8 }
  0x41   : > { %1809 = shalt.err (!%p1806_p4)
}
  0x42   : > { %s1810_s27 = scalar_lea.vmem %s2465_s25, 128  ;;  %s2229_s20 = smov [#allocation3]  }
  0x43   : > { %p1811_p6 = scmp.ne.s32.totalorder %s2465_s25, %s1810_s27  ;;  %s1815_s29 = sshll.u32 %s2229_s20, 4  ;;  %s1816_s29 = int_to_ptr.vmem [resolvable:$false] %s1815_s29 }
  0x44   : > { %s1817_s18 = scalar_lea.vmem %s1816_s29, 256  ;;  %p1818_p12 = scmp.lt.s32.totalorder %s2465_s25, %s1816_s29 }
  0x45   : > { %p1813_p7 = pnand %p1811_p6, %p1797_p3  ;;  %p1819_p10 = scmp.lt.s32.totalorder %s1817_s18, %s1810_s27 }
  0x47   : > { %p1814_p0 = pneg %p1813_p7  ;;  %p1820_p11 = por %p1819_p10, %p1818_p12 }
  0x49   : > { %p1821_p13 = pnand %p1820_p11, %p1814_p0 }
  0x4b   : > { %1824 = shalt.err (!%p1821_p13)
}
  0x4c   : > { %1619 = dma.hbm_to_vmem [thread:$0]  (!%p2469_p1), %s2463_s30, 128, %s2465_s25, %s2484_s12  }
  0x4d   : > { %s2513_s22 = sshll.u32 %s2219_s21, 7  ;;  %s384_s11 = scalar_lea.vmem [#allocation8], %s2482_s26 }
  0x4e   : > { %s391_s28 = sshll.u32 %s384_s11, 4  ;;  %s3059_s2 = sld [smem:[#allocation39_spill]]  ;;  %s392_s28 = int_to_ptr.vmem [resolvable:$true] %s391_s28 }
  0x4f   : > { %p2526_p9 = pneg %p2475_p5 }
  0x51   : > { %s3060_s30 = scalar_select %p2526_p9, 1, 0 }
  0x54   : > { %s2520_s27 = scalar_lea.hbm %s3059_s2, %s2513_s22  ;;  %s1830_s11 = scalar_lea.hbm %s3059_s2, 256 }
  0x55   : > { %s1825_s10 = scalar_lea.hbm %s2520_s27, 128  ;;  %p1831_p1 = scmp.lt.u32.totalorder %s2520_s27, %s3059_s2 }
  0x56   : > { %p1826_p4 = scmp.ne.s32.totalorder %s2520_s27, %s1825_s10  ;;  %p1832_p3 = scmp.lt.u32.totalorder %s1830_s11, %s1825_s10 }
  0x57   : > { %p1834_p2 = scmp.lt.u32.totalorder %s1825_s10, %s2520_s27 }
  0x58   : > { %p1828_p12 = pnand %p2526_p9, %p1826_p4  ;;  %p1833_p8 = por %p1832_p3, %p1831_p1 }
  0x5a   : > { %p1829_p0 = pneg %p1828_p12  ;;  %p1835_p6 = por %p1834_p2, %p1833_p8 }
  0x5c   : > { %p1836_p7 = pnand %p1835_p6, %p1829_p0 }
  0x5e   : > { %1839 = shalt.err (!%p1836_p7)
}
  0x5f   : > { %s1840_s19 = scalar_lea.vmem %s392_s28, 128  ;;  %s2230_s0 = smov [#allocation8]  }
  0x60   : > { %p1841_p10 = scmp.ne.s32.totalorder %s392_s28, %s1840_s19  ;;  %s1845_s7 = sshll.u32 %s2230_s0, 4  ;;  %s1846_s7 = int_to_ptr.vmem [resolvable:$false] %s1845_s7 }
  0x61   : > { %s1847_s25 = scalar_lea.vmem %s1846_s7, 256  ;;  %p1848_p4 = scmp.lt.s32.totalorder %s392_s28, %s1846_s7 }
  0x62   : > { %p1843_p11 = pnand %p1841_p10, %p2526_p9  ;;  %p1849_p12 = scmp.lt.s32.totalorder %s1847_s25, %s1840_s19 }
  0x64   : > { %p1844_p13 = pneg %p1843_p11  ;;  %p1850_p5 = por %p1849_p12, %p1848_p4 }
  0x66   : > { %p1851_p1 = pnand %p1850_p5, %p1844_p13 }
  0x68   : > { %1854 = shalt.err (!%p1851_p1)
}
  0x69   : > { %p3061_p3 = scmp.ne.s32.totalorder %s3058_s9, 0  ;;  %s3062_s3 = sld [smem:[#allocation40_spill]] }
  0x6a   : > { %s402_s7 = scalar_lea.vmem [#allocation9], %s2482_s26  ;;  %s3063_s4 = sld [smem:[#allocation41_spill]] }
  0x6b   : > { %1622 = dma.hbm_to_vmem [thread:$0]  (!%p3061_p3), %s2520_s27, 128, %s392_s28, %s2484_s12  }
  0x6c   : > { %s409_s19 = sshll.u32 %s402_s7, 4  ;;  %s410_s19 = int_to_ptr.vmem [resolvable:$true] %s409_s19 }
  0x6f   : > { %s2550_s0 = scalar_lea.hbm %s3062_s3, %s2513_s22  ;;  %s1860_s10 = scalar_lea.hbm %s3062_s3, 256 }
  0x70   : > { %s2557_s29 = scalar_lea.hbm %s3063_s4, %s2513_s22  ;;  %s1855_s25 = scalar_lea.hbm %s2550_s0, 128 }
  0x71   : > { %p1856_p5 = scmp.ne.s32.totalorder %s2550_s0, %s1855_s25  ;;  %p1861_p2 = scmp.lt.u32.totalorder %s2550_s0, %s3062_s3 }
  0x72   : > { %p1862_p6 = scmp.lt.u32.totalorder %s1860_s10, %s1855_s25  ;;  %p1864_p10 = scmp.lt.u32.totalorder %s1855_s25, %s2550_s0 }
  0x73   : > { %p1858_p0 = pnand %p1856_p5, %p2526_p9 }
  0x74   : > { %p1863_p7 = por %p1862_p6, %p1861_p2 }
  0x75   : > { %p1859_p8 = pneg %p1858_p0 }
  0x76   : > { %p1865_p11 = por %p1864_p10, %p1863_p7 }
  0x78   : > { %p1866_p13 = pnand %p1865_p11, %p1859_p8 }
  0x7a   : > { %1869 = shalt.err (!%p1866_p13)
}
  0x7b   : > { %s1870_s7 = scalar_lea.vmem %s410_s19, 128  ;;  %s2231_s11 = smov [#allocation9]  }
  0x7c   : > { %p1871_p4 = scmp.ne.s32.totalorder %s410_s19, %s1870_s7  ;;  %s1875_s20 = sshll.u32 %s2231_s11, 4  ;;  %s1876_s20 = int_to_ptr.vmem [resolvable:$false] %s1875_s20 }
  0x7d   : > { %s1877_s28 = scalar_lea.vmem %s1876_s20, 256  ;;  %p1878_p5 = scmp.lt.s32.totalorder %s410_s19, %s1876_s20 }
  0x7e   : > { %p1873_p12 = pnand %p1871_p4, %p2526_p9  ;;  %p1879_p0 = scmp.lt.s32.totalorder %s1877_s28, %s1870_s7 }
  0x80   : > { %p1874_p1 = pneg %p1873_p12  ;;  %p1880_p3 = por %p1879_p0, %p1878_p5 }
  0x82   : > { %p1881_p2 = pnand %p1880_p3, %p1874_p1 }
  0x84   : > { %1884 = shalt.err (!%p1881_p2)
}
  0x85   : > { %p3064_p6 = scmp.ne.s32.totalorder %s3058_s9, 0  ;;  %s420_s2 = scalar_lea.vmem [#allocation10], %s2482_s26 }
  0x86   : > { %s427_s25 = sshll.u32 %s420_s2, 4  ;;  %s3065_s5 = sld [smem:[#allocation42_spill]]  ;;  %s428_s25 = int_to_ptr.vmem [resolvable:$true] %s427_s25 }
  0x87   : > { %1625 = dma.hbm_to_vmem [thread:$0]  (!%p3064_p6), %s2550_s0, 128, %s410_s19, %s2484_s12  }
  0x88   : > { %s1885_s7 = scalar_lea.hbm %s2557_s29, 128  ;;  %s1890_s28 = scalar_lea.hbm %s3063_s4, 256 }
  0x89   : > { %p1886_p3 = scmp.ne.s32.totalorder %s2557_s29, %s1885_s7  ;;  %p1891_p10 = scmp.lt.u32.totalorder %s2557_s29, %s3063_s4 }
  0x8a   : > { %p1892_p11 = scmp.lt.u32.totalorder %s1890_s28, %s1885_s7  ;;  %p1894_p4 = scmp.lt.u32.totalorder %s1885_s7, %s2557_s29 }
  0x8b   : > { %p1888_p8 = pnand %p1886_p3, %p2526_p9 }
  0x8c   : > { %s2582_s18 = scalar_lea.hbm %s3065_s5, %s2513_s22  ;;  %p1893_p13 = por %p1892_p11, %p1891_p10 }
  0x8d   : > { %p1889_p7 = pneg %p1888_p8 }
  0x8e   : > { %p1895_p12 = por %p1894_p4, %p1893_p13 }
  0x90   : > { %p1896_p1 = pnand %p1895_p12, %p1889_p7 }
  0x92   : > { %1899 = shalt.err (!%p1896_p1)
}
  0x93   : > { %s1900_s0 = scalar_lea.vmem %s428_s25, 128  ;;  %s2232_s19 = smov [#allocation10]  }
  0x94   : > { %p1901_p5 = scmp.ne.s32.totalorder %s428_s25, %s1900_s0  ;;  %s1905_s2 = sshll.u32 %s2232_s19, 4  ;;  %s1906_s2 = int_to_ptr.vmem [resolvable:$false] %s1905_s2 }
  0x95   : > { %s1907_s27 = scalar_lea.vmem %s1906_s2, 256  ;;  %p1908_p3 = scmp.lt.s32.totalorder %s428_s25, %s1906_s2 }
  0x96   : > { %p1903_p0 = pnand %p1901_p5, %p2526_p9  ;;  %p1909_p8 = scmp.lt.s32.totalorder %s1907_s27, %s1900_s0 }
  0x98   : > { %p1904_p2 = pneg %p1903_p0  ;;  %p1910_p6 = por %p1909_p8, %p1908_p3 }
  0x9a   : > { %p1911_p10 = pnand %p1910_p6, %p1904_p2 }
  0x9c   : > { %1914 = shalt.err (!%p1911_p10)
}
  0x9d   : > { %p3066_p11 = scmp.ne.s32.totalorder %s3058_s9, 0  ;;  %s438_s3 = scalar_lea.vmem [#allocation11], %s2482_s26 }
  0x9e   : > { %s445_s8 = sshll.u32 %s438_s3, 4  ;;  %s1915_s10 = scalar_lea.hbm %s2582_s18, 128  ;;  %s446_s8 = int_to_ptr.vmem [resolvable:$true] %s445_s8 }
  0x9f   : > { %1628 = dma.hbm_to_vmem [thread:$0]  (!%p3066_p11), %s2557_s29, 128, %s428_s25, %s2484_s12  }
  0xa0   : > { %p1916_p7 = scmp.ne.s32.totalorder %s2582_s18, %s1915_s10  ;;  %s1920_s20 = scalar_lea.hbm %s3065_s5, 256 }
  0xa1   : > { %p1921_p4 = scmp.lt.u32.totalorder %s2582_s18, %s3065_s5  ;;  %p1922_p12 = scmp.lt.u32.totalorder %s1920_s20, %s1915_s10 }
  0xa2   : > { %p1918_p13 = pnand %p1916_p7, %p2526_p9  ;;  %p1924_p5 = scmp.lt.u32.totalorder %s1915_s10, %s2582_s18 }
  0xa3   : > { %p1923_p1 = por %p1922_p12, %p1921_p4 }
  0xa4   : > { %p1919_p6 = pneg %p1918_p13 }
  0xa5   : > { %p1925_p0 = por %p1924_p5, %p1923_p1 }
  0xa7   : > { %p1926_p2 = pnand %p1925_p0, %p1919_p6 }
  0xa9   : > { %1929 = shalt.err (!%p1926_p2)
}
  0xaa   : > { %s1930_s29 = scalar_lea.vmem %s446_s8, 128  ;;  %s2233_s25 = smov [#allocation11]  }
  0xab   : > { %p1931_p3 = scmp.ne.s32.totalorder %s446_s8, %s1930_s29  ;;  %s1935_s19 = sshll.u32 %s2233_s25, 4  ;;  %s1936_s19 = int_to_ptr.vmem [resolvable:$false] %s1935_s19 }
  0xac   : > { %s1937_s2 = scalar_lea.vmem %s1936_s19, 256  ;;  %p1938_p7 = scmp.lt.s32.totalorder %s446_s8, %s1936_s19 }
  0xad   : > { %p1933_p8 = pnand %p1931_p3, %p2526_p9  ;;  %p1939_p13 = scmp.lt.s32.totalorder %s1937_s2, %s1930_s29 }
  0xaf   : > { %p1934_p10 = pneg %p1933_p8  ;;  %p1940_p11 = por %p1939_p13, %p1938_p7 }
  0xb1   : > { %p1941_p4 = pnand %p1940_p11, %p1934_p10 }
  0xb3   : > { %1944 = shalt.err (!%p1941_p4)
}
  0xb4   : > { %p3067_p12 = scmp.ne.s32.totalorder %s3058_s9, 0  ;;  %p3017_p6 = scmp.eq.s32.totalorder %s2395_s24, 0 }
  0xb5   : > { %p1512_p11 = scmp.ge.s32.totalorder %s2227_s23, 1  ;;  %p316_p1 = scmp.lt.s32.totalorder %s2227_s23, 5 }
  0xb6   : > { %1631 = dma.hbm_to_vmem [thread:$0]  (!%p3067_p12), %s2582_s18, 128, %s446_s8, %s2484_s12  }
  0xb7   : > { %p3068_p5 = scmp.ne.s32.totalorder %s2203_s17, %s2199_s16  ;;  %p3070_p2 = scmp.ne.s32.totalorder %s2191_s14, %s2187_s13 }
  0xb8   : > { %p2642_p8 = pnand %p1512_p11, %p316_p1  ;;  %s2234_s18 = smov [#allocation6]  }
  0xb9   : > { %p2629_p0 = por %p3017_p6, %p3068_p5  ;;  %p2638_p3 = por %p3070_p2, %p3017_p6 }
  0xba   : > { %s3072_s10 = scalar_select %p2642_p8, 1, 0 }
  0xbb   : > { %s3069_s27 = scalar_select %p2629_p0, 1, 0 }
  0xbc   : > { %s3071_s3 = scalar_select %p2638_p3, 1, 0 }
  0xbd   : > { %s329_s8 = sshll.u32 %s2234_s18, 4  ;;  %s3073_s7 = sand.u32 1, %s2195_s15   ;;  %s330_s8 = int_to_ptr.vmem [resolvable:$true] %s329_s8 }
  0xbe   : > { %s1527_s11 = sshll.u32 %s3073_s7, 2  ;;  %p1606_p10 = pneg %p2642_p8 }
  0xbf   : > { %s1528_s20 = sshll.u32 %s2219_s21, 6  ;;  %s456_s28 = scalar_lea.vmem [#allocation12], %s1527_s11 }
  0xc0   : > { %s463_s0 = sshll.u32 %s456_s28, 4  ;;  %p2653_p7 = pnand %p1606_p10, %p3017_p6  ;;  %s2662_s0 = int_to_ptr.vmem [resolvable:$true] %s463_s0 }
  0xc1   : > { %s3075_s6 = sld [smem:[#allocation43_spill]]  ;;  %s2235_s2 = smov [#allocation14]  }
  0xc2   : > { %s3074_s13 = scalar_select %p2653_p7, 1, 0 }
  0xc3   : > { %s2664_s18 = sshll.u32 %s2235_s2, 4  ;;  %s3076_s1 = sld [smem:[#allocation38_spill]]  ;;  %s341_s18 = int_to_ptr.vmem [resolvable:$true] %s2664_s18 }
  0xc4   : > { %p2674_p4 = pneg %p2653_p7 }
  0xc7   : > { %s2660_s19 = scalar_lea.hbm %s3075_s6, %s1528_s20 }
  0xc9   : > { %s1945_s11 = scalar_lea.hbm %s3076_s1, 128 }
  0xca   : > { %p1946_p13 = scmp.ne.s32.totalorder %s3076_s1, %s1945_s11  ;;  %p1952_p5 = scmp.lt.u32.totalorder %s1945_s11, %s3076_s1 }
  0xcc   : > { %p1948_p11 = pnand %p2674_p4, %p1946_p13 }
  0xce   : > { %p1949_p1 = pneg %p1948_p11 }
  0xd0   : > { %p1954_p2 = pnand %p1952_p5, %p1949_p1 }
  0xd2   : > { %1957 = shalt.err (!%p1954_p2)
}
  0xd3   : > { %s1958_s4 = scalar_lea.vmem %s330_s8, 128  ;;  %p1966_p0 = scmp.lt.s32.totalorder %s330_s8, %s330_s8 }
  0xd4   : > { %p1959_p10 = scmp.ne.s32.totalorder %s330_s8, %s1958_s4  ;;  %p1967_p8 = scmp.lt.s32.totalorder %s1958_s4, %s1958_s4 }
  0xd6   : > { %p1961_p6 = pnand %p1959_p10, %p2674_p4  ;;  %p1968_p12 = por %p1967_p8, %p1966_p0 }
  0xd8   : > { %p1962_p3 = pneg %p1961_p6 }
  0xda   : > { %p1969_p9 = pnand %p1968_p12, %p1962_p3 }
  0xdc   : > { %1972 = shalt.err (!%p1969_p9)
}
  0xdd   : > { %1609 = dma.hbm_to_vmem [thread:$0]  (!%p2653_p7), %s3076_s1, 128, %s330_s8, [#allocation7]  }
  0xde   : > { %s1973_s2 = scalar_lea.hbm %s2660_s19, 64  ;;  %p3078_p11 = scmp.ne.s32.totalorder %s3060_s30, 0 }
  0xdf   : > { %p1974_p13 = scmp.ne.s32.totalorder %s2660_s19, %s1973_s2  ;;  %s1978_s28 = scalar_lea.hbm %s3075_s6, 128 }
  0xe0   : > { %p1979_p9 = scmp.lt.u32.totalorder %s2660_s19, %s3075_s6  ;;  %p1980_p12 = scmp.lt.u32.totalorder %s1978_s28, %s1973_s2 }
  0xe1   : > { %p1976_p6 = pnand %p1974_p13, %p3078_p11  ;;  %p1982_p3 = scmp.lt.u32.totalorder %s1973_s2, %s2660_s19 }
  0xe2   : > { %p1981_p0 = por %p1980_p12, %p1979_p9 }
  0xe3   : > { %p1977_p1 = pneg %p1976_p6 }
  0xe4   : > { %p1983_p8 = por %p1982_p3, %p1981_p0 }
  0xe6   : > { %p1984_p5 = pnand %p1983_p8, %p1977_p1 }
  0xe8   : > { %1987 = shalt.err (!%p1984_p5)
}
  0xe9   : > { %s1988_s8 = scalar_lea.vmem %s2662_s0, 64  ;;  %s2236_s4 = smov [#allocation12]  }
  0xea   : > { %p1989_p2 = scmp.ne.s32.totalorder %s2662_s0, %s1988_s8  ;;  %s1993_s5 = sshll.u32 %s2236_s4, 4  ;;  %s1994_s5 = int_to_ptr.vmem [resolvable:$false] %s1993_s5 }
  0xeb   : > { %s1995_s25 = scalar_lea.vmem %s1994_s5, 128  ;;  %p1996_p6 = scmp.lt.s32.totalorder %s2662_s0, %s1994_s5 }
  0xec   : > { %p1991_p10 = pnand %p1989_p2, %p3078_p11  ;;  %p1997_p7 = scmp.lt.s32.totalorder %s1995_s25, %s1988_s8 }
  0xee   : > { %p1992_p13 = pneg %p1991_p10  ;;  %p1998_p9 = por %p1997_p7, %p1996_p6 }
  0xf0   : > { %p1999_p12 = pnand %p1998_p9, %p1992_p13 }
  0xf2   : > { %2002 = shalt.err (!%p1999_p12)
}
  0xf3   : > { %p3079_p1 = scmp.ne.s32.totalorder %s3058_s9, 0  ;;  %s3080_s11 = sld [smem:[#allocation45_spill]] }
  0xf5   : > { %1634 = dma.hbm_to_vmem [thread:$0]  (!%p3079_p1), %s2660_s19, 64, %s2662_s0, %s2484_s12  }
  0xf9   : > { %s2003_s28 = scalar_lea.hbm %s3080_s11, 32 }
  0xfa   : > { %p2004_p0 = scmp.ne.s32.totalorder %s3080_s11, %s2003_s28  ;;  %p2010_p8 = scmp.lt.u32.totalorder %s2003_s28, %s3080_s11 }
  0xfc   : > { %p2006_p7 = pnand %p2004_p0, %p2674_p4 }
  0xfe   : > { %p2007_p3 = pneg %p2006_p7 }
 0x100   : > { %p2012_p5 = pnand %p2010_p8, %p2007_p3 }
 0x102   : > { %2015 = shalt.err (!%p2012_p5)
}
 0x103   : > { %s2016_s5 = scalar_lea.vmem %s341_s18, 32  ;;  %p2024_p6 = scmp.lt.s32.totalorder %s341_s18, %s341_s18 }
 0x104   : > { %p2017_p2 = scmp.ne.s32.totalorder %s341_s18, %s2016_s5  ;;  %p2025_p9 = scmp.lt.s32.totalorder %s2016_s5, %s2016_s5 }
 0x106   : > { %p2019_p10 = pnand %p2017_p2, %p2674_p4  ;;  %p2026_p12 = por %p2025_p9, %p2024_p6 }
 0x108   : > { %p2020_p13 = pneg %p2019_p10 }
 0x10a   : > { %p2027_p1 = pnand %p2026_p12, %p2020_p13 }
 0x10c   : > { %2030 = shalt.err (!%p2027_p1)
}
 0x10d   : > { %p3081_p0 = scmp.ne.s32.totalorder %s3074_s13, 0  ;;  %s2237_s25 = smov [#allocation15]  }
 0x10e   : > { %s351_s2 = sshll.u32 %s2237_s25, 4  ;;  %s3082_s20 = sld [smem:[#allocation44_spill]]  ;;  %s352_s2 = int_to_ptr.vmem [resolvable:$true] %s351_s2 }
 0x10f   : > { %1612 = dma.hbm_to_vmem [thread:$0]  (!%p3081_p0), %s3080_s11, 32, %s341_s18, [#allocation7]  }
 0x110   : > { %s3084_s1 = sld [smem:[#allocation46_spill]] }
 0x114   : > { %s3083_s29 = smov %s3082_s20  ;;  %s2735_s8 = scalar_lea.hbm %s3082_s20, %s2513_s22 }
 0x116   : > { %s2031_s6 = scalar_lea.hbm %s3084_s1, 32 }
 0x117   : > { %p2032_p1 = scmp.ne.s32.totalorder %s3084_s1, %s2031_s6  ;;  %p2038_p8 = scmp.lt.u32.totalorder %s2031_s6, %s3084_s1 }
 0x119   : > { %p2034_p7 = pnand %p2032_p1, %p2674_p4 }
 0x11b   : > { %p2035_p3 = pneg %p2034_p7 }
 0x11d   : > { %p2040_p5 = pnand %p2038_p8, %p2035_p3 }
 0x11f   : > { %2043 = shalt.err (!%p2040_p5)
}
 0x120   : > { %s2044_s19 = scalar_lea.vmem %s352_s2, 32  ;;  %p2052_p6 = scmp.lt.s32.totalorder %s352_s2, %s352_s2 }
 0x121   : > { %p2045_p2 = scmp.ne.s32.totalorder %s352_s2, %s2044_s19  ;;  %p2053_p9 = scmp.lt.s32.totalorder %s2044_s19, %s2044_s19 }
 0x123   : > { %p2047_p10 = pnand %p2045_p2, %p2674_p4  ;;  %p2054_p12 = por %p2053_p9, %p2052_p6 }
 0x125   : > { %p2048_p13 = pneg %p2047_p10 }
 0x127   : > { %p2055_p11 = pnand %p2054_p12, %p2048_p13 }
 0x129   : > { %2058 = shalt.err (!%p2055_p11)
}
 0x12a   : > { %1615 = dma.hbm_to_vmem [thread:$0]  (!%p3081_p0), %s3084_s1, 32, %s352_s2, [#allocation16]  }
 0x12b   : > { %s474_s6 = scalar_lea.vmem [#allocation13], %s2482_s26  ;;  %s2059_s22 = scalar_lea.hbm %s2735_s8, 128 }
 0x12c   : > { %s481_s21 = sshll.u32 %s474_s6, 4  ;;  %p2060_p4 = scmp.ne.s32.totalorder %s2735_s8, %s2059_s22  ;;  %s482_s21 = int_to_ptr.vmem [resolvable:$true] %s481_s21 }
 0x12d   : > { %p3085_p1 = scmp.ne.s32.totalorder %s3060_s30, 0  ;;  %s2064_s7 = scalar_lea.hbm %s3083_s29, 256 }
 0x12e   : > { %p2065_p3 = scmp.lt.u32.totalorder %s2735_s8, %s3083_s29  ;;  %p2066_p8 = scmp.lt.u32.totalorder %s2064_s7, %s2059_s22 }
 0x12f   : > { %p2062_p7 = pnand %p2060_p4, %p3085_p1  ;;  %p2068_p2 = scmp.lt.u32.totalorder %s2059_s22, %s2735_s8 }
 0x130   : > { %p2067_p5 = por %p2066_p8, %p2065_p3 }
 0x131   : > { %p2063_p11 = pneg %p2062_p7 }
 0x132   : > { %p2069_p0 = por %p2068_p2, %p2067_p5 }
 0x134   : > { %p2070_p10 = pnand %p2069_p0, %p2063_p11 }
 0x136   : > { %2073 = shalt.err (!%p2070_p10)
}
 0x137   : > { %s2074_s26 = scalar_lea.vmem %s482_s21, 128  ;;  %s2238_s2 = smov [#allocation13]  }
 0x138   : > { %p2075_p13 = scmp.ne.s32.totalorder %s482_s21, %s2074_s26  ;;  %s2079_s4 = sshll.u32 %s2238_s2, 4  ;;  %s2080_s4 = int_to_ptr.vmem [resolvable:$false] %s2079_s4 }
 0x139   : > { %s2081_s5 = scalar_lea.vmem %s2080_s4, 256  ;;  %p2082_p12 = scmp.lt.s32.totalorder %s482_s21, %s2080_s4 }
 0x13a   : > { %p2077_p6 = pnand %p2075_p13, %p3085_p1  ;;  %p2083_p4 = scmp.lt.s32.totalorder %s2081_s5, %s2074_s26 }
 0x13c   : > { %p2078_p9 = pneg %p2077_p6  ;;  %p2084_p7 = por %p2083_p4, %p2082_p12 }
 0x13e   : > { %p2085_p3 = pnand %p2084_p7, %p2078_p9 }
 0x140   : > { %2088 = shalt.err (!%p2085_p3)
}
 0x141   : > { %p3086_p8 = scmp.ne.s32.totalorder %s3058_s9, 0  ;;  %p3087_p11 = scmp.ne.s32.totalorder %s3072_s10, 0 }
 0x142   : > { %s492_s30 = sand.u32 (!%p3087_p11), 1, %s2395_s24   ;;  %s2778_s18 = sand.u32 (!%p3087_p11), 1, %s2203_s17  }
 0x143   : > { %1637 = dma.hbm_to_vmem [thread:$0]  (!%p3086_p8), %s2735_s8, 128, %s482_s21, %s2484_s12  }
 0x144   : > { %490 = sbr.rel (%p3087_p11) target bundleno = 1628 (0x65c), region = 60  ;;  %s1532_s0 = sshll.u32 (!%p3087_p11), %s2778_s18, 3 }
 0x145   : > { %s493_s19 = scalar_lea.sflag (!%p3087_p11), [#allocation4], %s492_s30  ;;  %s496_s15 = scalar_lea.vmem (!%p3087_p11), [#allocation3], %s1532_s0 }
 0x146   : > { %p3088_p1 = scmp.ne.s32.totalorder (!%p3087_p11), %s3069_s27, 0 }
 0x14b   : > { %2162 = dma.done.wait (%p3088_p1), %s493_s19, 128  }
 0x14c   : > { %2164 = vsyncadd (%p3088_p1), %s493_s19, 4294967168  ;;  %p3089_p5 = scmp.eq.s32.totalorder %s2395_s24, 0 }
 0x14e   : > { %2166 = dma.done.wait (%p3089_p5), [#allocation7], 128   ;;  %p3090_p2 = pmov %p3089_p5 }
 0x14f   : > { %s507_s9 = sand.u32 1, %s2191_s14   ;;  %p3091_p0 = scmp.ne.s32.totalorder %s3071_s3, 0 }
 0x150   : > { %2168 = vsyncadd (%p3090_p2), [#allocation7], 4294967168  ;;  %s2790_s12 = sshll.u32 %s507_s9, 3 }
 0x151   : > { %s509_s10 = scalar_lea.vmem [#allocation8], %s2790_s12 }
 0x152   : > { %2170 = dma.done.wait (%p3091_p0), %s493_s19, 704  }
 0x153   : > { %2172 = vsyncadd (%p3091_p0), %s493_s19, 4294966592  ;;  %s2797_s27 = sshll.u32 %s507_s9, 2  ;;  %s518_s8 = scalar_lea.vmem [#allocation9], %s2790_s12 }
 0x154   : > { %s527_s16 = scalar_lea.vmem [#allocation10], %s2790_s12  ;;  %s536_s6 = scalar_lea.vmem [#allocation11], %s2790_s12 }
 0x155   : > { %s545_s21 = scalar_lea.vmem [#allocation12], %s2797_s27  ;;  %s554_s22 = scalar_lea.vmem [#allocation13], %s2790_s12 }
 0x156   : > { %p3092_p10 = pmov %p3090_p2 }
 0x157   : > { %p3093_p13 = pmov %p3090_p2 }
 0x158   : > { %2174 = dma.done.wait (%p3092_p10), [#allocation7], 32  }
 0x159   : > { %2176 = vsyncadd (%p3093_p13), [#allocation7], 4294967264  ;;  %p3094_p6 = pmov %p3090_p2 }
 0x15a   : > { %p3095_p9 = pmov %p3090_p2 }
 0x15b   : > { %2178 = dma.done.wait (%p3094_p6), [#allocation16], 32  }
 0x15c   : > { %2180 = vsyncadd (%p3095_p9), [#allocation16], 4294967264  ;;  %s1542_s3 = sshll.u32 %s2778_s18, 4  ;;  %s3096_s13 = sld [smem:[#allocation27_spill]] }
 0x15d   : > { %s2813_s25 = scalar_lea.vmem [#allocation17], %s1542_s3 }
 0x162   : > { %p1543_p12 = scmp.ne.s32.totalorder %s3096_s13, 0 }
 0x163   : > { %v634_v0 = vld [vmem:[%s496_s15] sm:$0xff] (!%p1543_p12)  ;;  %vm635_vm0 = vcmask (!%p1543_p12), 113664  }
 0x164   : > { %633 = sbr.rel (%p1543_p12) target bundleno = 363 (0x16b), region = 104  ;;  %636 = vst.msk [vmem:[#allocation2] sm:$0xff] (!%p1543_p12), %vm635_vm0, %v634_v0 }
 0x16b PF: > { %v638_v1 = vld [vmem:[%s509_s10] sm:$0xff]  ;;  %v2239_v2 = vmov 3   ;;  %v2240_v3 = vmov 1   ;;  %v646_v4 = vlaneseq  ;;  %v2818_v6 = vld [vmem:[#allocation6] sm:$0x7f]  ;;  %v2241_v8 = vmov 4  }
 0x16c   : > { %1787 = vset.pattern.permute.xlu1 %v2239_v2  ;;  %1785 = vset.pattern.permute.xlu0 %v2240_v3  ;;  %v2242_v9 = vmov 2   ;;  %v2243_v12 = vmov 5   ;;  %s2244_s24 = smov 1   ;;  %v2245_v15 = vmov 0   ;;  %s2246_s7 = smov 2   ;;  %v2247_v18 = vmov 6  }
 0x16d   : > { %690 = vperm.xlu1 %1787, %v638_v1   ;;  %652 = vperm.xlu0 %1785, %v638_v1   ;;  %v2816_v5 = vshrl.u32 %v646_v4, 7  ;;  %s2248_s28 = smov 5   ;;  %s2249_s20 = smov 4   ;;  %v756_v22 = vld [vmem:[%s518_s8] sm:$0xff]  ;;  %v2832_v23 = vld [vmem:[#allocation2] sm:$0xff]  ;;  %vm2259_vm1 = vmmov 0  }
 0x16e   : > { %s2250_s26 = smov 6   ;;  %s2251_s2 = smov 125   ;;  %v764_v45 = vld [vmem:[%s527_s16] sm:$0xff]  ;;  %v776_v47 = vld [vmem:[%s536_s6] sm:$0xff]  ;;  %vm798_vm2 = vcmask 1043456   ;;  %vm794_vm3 = vcmask 64512  }
 0x16f   : > { %v658_v7 = vsub.s32 1, %v2816_v5  ;;  %v677_v11 = vsub.s32 2, %v2816_v5  ;;  %v725_v14 = vsub.s32 5, %v2816_v5  ;;  %v706_v16 = vsub.s32 4, %v2816_v5  ;;  %s2252_s4 = smov 127   ;;  %s2253_s5 = smov 126  }
 0x170   : > { %v744_v20 = vsub.s32 6, %v2816_v5  ;;  %s2254_s30 = smov 123   ;;  %s2255_s0 = smov 124   ;;  %v2846_v48 = vsub.s32 0, %v2816_v5  ;;  %vm847_vm4 = vcmask 89112  }
 0x171   : > { %1788 = vset.pattern.permute.xlu1 %v2241_v8  ;;  %1786 = vset.pattern.permute.xlu0 %v2242_v9  ;;  %v659_v10 = vrot.slane %v2818_v6, %v658_v7  ;;  %v678_v13 = vrot.slane %v2818_v6, %v677_v11  ;;  %v726_v17 = vrot.slane %v2818_v6, %v725_v14  ;;  %s2256_s19 = smov 122   ;;  %s2257_s15 = smov 3   ;;  %v2258_v8 = vmov 0.0  }
 0x172   : > { %700 = vperm.xlu1 %1788, %v638_v1   ;;  %671 = vperm.xlu0 %1786, %v638_v1   ;;  %v707_v19 = vrot.slane %v2818_v6, %v706_v16  ;;  %v745_v21 = vrot.slane %v2818_v6, %v744_v20  ;;  %v649_v51 = vrot.slane %v2818_v6, %v2846_v48  ;;  %v785_v6 = vld [vmem:[%s554_s22] sm:$0xff]  ;;  %v783_v16 = vld [vmem:[%s545_s21] sm:$0xf]  ;;  %s3097_s9 = sld [smem:[#allocation27_spill]] }
 0x173   : > { %1561 = vmatprep.subr.bf16.mxu0 %v2258_v8  ;;  %1563 = vmatprep.mubr.msk.bf16.mxu0 %vm2259_vm1, %v2258_v8 }
 0x176   : > { %1789 = vset.pattern.permute.xlu1 %v2243_v12  ;;  %661 = vrot.lane.b32.xlu0 %v659_v10, %s2244_s24 }
 0x177   : > { %719 = vperm.xlu1 %1789, %v638_v1   ;;  %1791 = vset.pattern.permute.xlu0 %v2245_v15 }
 0x178   : > { %p1545_p4 = scmp.ne.s32.totalorder %s3097_s9, 1 }
 0x179   : > { %s2260_s12 = smov (!%p1545_p4), 124   ;;  %vm2264_vm5 = vmmov (!%p1545_p4), 0   ;;  %vm1059_vm6 = vcmask (!%p1545_p4), 31744   ;;  %s2268_s10 = smov (!%p1545_p4), 4   ;;  %vm1057_vm8 = vcmask (!%p1545_p4), 15360   ;;  %vm1061_vm9 = vcmask (!%p1545_p4), 48128  }
 0x17a   : > { %680 = vrot.lane.b32.xlu0 %v678_v13, %s2246_s7  ;;  %vm1576_vm7 = vmpackc.low (!%p1545_p4), %vm1059_vm6, %vm1059_vm6  ;;  %s2269_s27 = smov (!%p1545_p4), 6   ;;  %s2270_s8 = smov (!%p1545_p4), 2   ;;  %vm1064_vm10 = vcmask (!%p1545_p4), 80896   ;;  %vm1066_vm11 = vcmask (!%p1545_p4), 97280   ;;  %vm1068_vm12 = vcmask (!%p1545_p4), 113664  }
 0x17b   : > { %1790 = vset.pattern.permute.xlu1 %v2247_v18  ;;  %s2271_s16 = smov (!%p1545_p4), 10   ;;  %s2272_s6 = smov (!%p1545_p4), 8  }
 0x17c   : > { %738 = vperm.xlu1 %1790, %v638_v1   ;;  %s2273_s21 = smov (!%p1545_p4), 14   ;;  %s2274_s22 = smov (!%p1545_p4), 12  }
 0x17d   : > { %s2275_s3 = smov (!%p1545_p4), 126   ;;  %s2276_s13 = smov (!%p1545_p4), 120  }
 0x17e   : > { %728 = vrot.lane.b32.xlu0 %v726_v17, %s2248_s28  ;;  %s2277_s24 = smov (!%p1545_p4), 122   ;;  %s2278_s7 = smov (!%p1545_p4), 116  }
 0x17f   : > { %s2279_s28 = smov (!%p1545_p4), 118  }
 0x180   : > { %709 = vrot.lane.b32.xlu1 %v707_v19, %s2249_s20  ;;  %s2280_s20 = smov (!%p1545_p4), 114  }
 0x181   : > { %1792 = vset.pattern.permute.xlu1 %v2245_v15 }
 0x182   : > { %642 = vperm.xlu0 %1791, %v638_v1  }
 0x184   : > { %747 = vrot.lane.b32.xlu1 %v745_v21, %s2250_s26 }
 0x188   : > { %759 = vperm.xlu1 %1792, %v756_v22  }
 0x1ec   : > { %v691_v24 = vpop.permute.xlu1 %690  ;;  %v653_v25 = vpop.permute.xlu0 %652 }
 0x1ed   : > { %v693_v26 = vmul.f32 %v691_v24, %v2832_v23  ;;  %v655_v29 = vmul.f32 %v653_v25, %v2832_v23  ;;  %v2261_v25 = vmov (!%p1545_p4), 0  }
 0x1ef   : > { %695 = vrot.lane.b32.xlu0 %v693_v26, %s2251_s2  ;;  %v1546_v26 = vld.sshfl [vmem:[#allocation15] sm:$0x11 pattern:$0x75316420] (!%p1545_p4) }
 0x1f1   : > { %v701_v27 = vpop.permute.xlu1 %700  ;;  %v672_v28 = vpop.permute.xlu0 %671 }
 0x1f2   : > { %v674_v31 = vmul.f32 %v672_v28, %v2832_v23  ;;  %v703_v39 = vmul.f32 %v701_v27, %v2832_v23  ;;  %v2262_v27 = vmov (!%p1545_p4), 1966171168  }
 0x1f3   : > { %v934_v28 = vunpack.c.l.s4 (!%p1545_p4), %v2262_v27 }
 0x1f5   : > { %v662_v30 = vpop.permute.xlu0 %661 }
 0x1f6   : > { %v664_v32 = vmul.f32 %v662_v30, %v655_v29  ;;  %v720_v33 = vpop.permute.xlu1 %719  ;;  %v932_v29 = vcombine.high (!%p1545_p4), %v1546_v26, %v1546_v26  ;;  %v935_v30 = vunpack.c.0.s8 (!%p1545_p4), %v934_v28 }
 0x1f7   : > { %v722_v37 = vmul.f32 %v720_v33, %v2832_v23 }
 0x1f8   : > { %666 = vrot.lane.b32.xlu1 %v664_v32, %s2252_s4  ;;  %v938_v32 = vsub.s32 (!%p1545_p4), %v935_v30, %v2816_v5 }
 0x1f9   : > { %v681_v34 = vpop.permute.xlu0 %680 }
 0x1fa   : > { %v683_v35 = vmul.f32 %v681_v34, %v674_v31  ;;  %v2263_v31 = vmov (!%p1545_p4), 0.0|0.0   ;;  %v946_v33 = vrot.slane (!%p1545_p4), %v932_v29, %v938_v32  ;;  %v939_v34 = vrot.slane (!%p1545_p4), %v1546_v26, %v938_v32 }
 0x1fb   : > { %v739_v36 = vpop.permute.xlu1 %738 }
 0x1fc   : > { %685 = vrot.lane.b32.xlu1 %v683_v35, %s2253_s5  ;;  %v741_v43 = vmul.f32 %v739_v36, %v2832_v23  ;;  %v954_v35 = vrot.slane (!%p1545_p4), %v946_v33, %v2846_v48  ;;  %v950_v36 = vrot.slane (!%p1545_p4), %v939_v34, %v2846_v48 }
 0x1fd   : > { %v729_v38 = vpop.permute.xlu0 %728 }
 0x1fe   : > { %v731_v40 = vmul.f32 %v729_v38, %v722_v37  ;;  %v2265_v37 = vmov (!%p1545_p4), 0.0   ;;  %v2266_v38 = vmov (!%p1545_p4), 1983009808  }
 0x1ff   : > { %v710_v41 = vpop.permute.xlu1 %709 }
 0x200   : > { %v712_v42 = vmul.f32 %v710_v41, %v703_v39  ;;  %733 = vrot.lane.b32.xlu1 %v731_v40, %s2254_s30  ;;  %v858_v39 = vunpack.c.l.s4 (!%p1545_p4), %v2266_v38  ;;  %v2267_v41 = vmov (!%p1545_p4), 1934713408  }
 0x201   : > { %v643_v49 = vpop.permute.xlu0 %642 }
 0x202   : > { %714 = vrot.lane.b32.xlu0 %v712_v42, %s2255_s0  ;;  %v645_v50 = vmul.f32 %v643_v49, %v2832_v23  ;;  %v859_v40 = vunpack.c.0.s8 (!%p1545_p4), %v858_v39  ;;  %v889_v42 = vunpack.c.l.s4 (!%p1545_p4), %v2267_v41 }
 0x203   : > { %v748_v44 = vpop.permute.xlu1 %747 }
 0x204   : > { %v750_v46 = vmul.f32 %v748_v44, %v741_v43  ;;  %v650_v53 = vmul.f32 %v649_v51, %v645_v50  ;;  %v2865_v43 = vsub.s32 (!%p1545_p4), %v859_v40, %v2816_v5 }
 0x206   : > { %767 = vperm.xlu0 %1791, %v764_v45   ;;  %752 = vrot.lane.b32.xlu1 %v750_v46, %s2256_s19  ;;  %v890_v45 = vunpack.c.0.s8 (!%p1545_p4), %v889_v42 }
 0x207   : > { %v760_v52 = vpop.permute.xlu1 %759 }
 0x208   : > { %v2871_v49 = vsub.s32 (!%p1545_p4), %v890_v45, %v2816_v5 }
 0x20a   : > { %779 = vperm.xlu0 %1791, %v776_v47  }
 0x20e   : > { %1793 = vset.pattern.permute.xlu0 (!%p1545_p4), %v2261_v25 }
 0x261   : > { %v696_v58 = vpop.permute.xlu0 %695 }
 0x26a   : > { %v667_v54 = vpop.permute.xlu1 %666 }
 0x26b   : > { %v669_v55 = vadd.f32 %v667_v54, %v650_v53 }
 0x26e   : > { %v686_v56 = vpop.permute.xlu1 %685 }
 0x26f   : > { %v688_v57 = vadd.f32 %v686_v56, %v669_v55 }
 0x271   : > { %v698_v59 = vadd.f32 %v696_v58, %v688_v57 }
 0x272   : > { %v734_v61 = vpop.permute.xlu1 %733 }
 0x274   : > { %v715_v60 = vpop.permute.xlu0 %714 }
 0x275   : > { %v717_v62 = vadd.f32 %v715_v60, %v698_v59 }
 0x277   : > { %v736_v63 = vadd.f32 %v734_v61, %v717_v62 }
 0x278   : > { %v753_v0 = vpop.permute.xlu1 %752 }
 0x279   : > { %v755_v1 = vadd.f32 %v753_v0, %v736_v63 }
 0x27b   : > { %v762_v2 = vadd.f32 %v760_v52, %v755_v1 }
 0x27d   : > { %v763_v3 = vmax.f32 %v762_v2, 0.0 }
 0x285   : > { %v768_v4 = vpop.permute.xlu0 %767 }
 0x286   : > { %v770_v7 = vmul.f32 %v768_v4, %v763_v3 }
 0x288   : > { %772 = vrot.lane.b32.xlu1 %v770_v7, %s2257_s15 }
 0x289   : > { %v780_v11 = vpop.permute.xlu0 %779 }
 0x28c   : > { %788 = vperm.xlu1 %1792, %v785_v6  }
 0x290   : > { %1794 = vset.pattern.permute.xlu1 (!%p1545_p4), %v2261_v25 }
 0x291   : > { %960 = vperm.xlu1 (!%p1545_p4), %1794, %v954_v35  }
 0x2fa   : > { %v773_v9 = vpop.permute.xlu1 %772 }
 0x2fb   : > { %v775_v10 = vadd.f32 %v773_v9, %v2832_v23 }
 0x2fd   : > { %v782_v12 = vadd.f32 %v780_v11, %v775_v10 }
 0x2ff   : > { %v784_v13 = vpack.c.bf16 %v782_v12, %v782_v12  ;;  %v922_v12 = vld [vmem:[#allocation14] sm:$0x3] (!%p1545_p4) }
 0x301   : > { %792 = vrot.lane.b32.xlu0 %v784_v13, %s2251_s2 }
 0x30b   : > { %v789_v17 = vpop.permute.xlu1 %788 }
 0x310   : > { %v961_v13 = vpop.permute.xlu1 (!%p1545_p4), %960 }
 0x373   : > { %v793_v14 = vpop.permute.xlu0 %792 }
 0x374   : > { %v800_v15 = vsel %vm798_vm2, %v793_v14, 0 }
 0x375   : > { %1562 = vmatpush3.bf16.msra.mxu0 %v800_v15  ;;  %v978_v15 = vcombine.high (!%p1545_p4), %v961_v13, %v2265_v37 }
 0x376   : > { %1574 = vmatprep.subr.bf16.mxu0 (!%p1545_p4), %v2263_v31 }
 0x378   : > { %1564 = vmatmul.mubr.msk.bf16.vlgmr.msra.gmra.mrb[0].mxu0 %vm794_vm3, %v783_v16  ;;  %v985_v16 = vrot.slane (!%p1545_p4), %v961_v13, %v2865_v43 }
 0x379   : > { %1571 = vmatprep.mubr.msk.f32.mxu0 (!%p1545_p4), %vm2264_vm5, %v2265_v37 }
 0x44b   : > { %v836_v18 = vpop.f32.mrb[0].mxu0 }
 0x44c   : > { %v837_v19 = vadd.f32 %v836_v18, %v789_v17  ;;  %v1565_v20 = vpop.f32.mrb[1].mxu0 }
 0x44d   : > { %v839_v21 = vpop.f32.mrb[2].mxu0 }
 0x44e   : > { %v842_v22 = vmax.f32 %v837_v19, 0.0  ;;  %v1566_v23 = vpop.f32.mrb[3].mxu0  ;;  %v992_v19 = vrot.slane (!%p1545_p4), %v978_v15, %v2865_v43 }
 0x450   : > { %844 = vrot.lane.b32.xlu0 %v842_v22, %s2257_s15  ;;  %v856_v44 = vcombine.high (!%p1545_p4), %v842_v22, %v2265_v37  ;;  %v863_v46 = vrot.slane (!%p1545_p4), %v842_v22, %v2865_v43 }
 0x452   : > { %v870_v48 = vrot.slane (!%p1545_p4), %v856_v44, %v2865_v43 }
 0x454   : > { %853 = vrot.lane.b32.xlu0 (!%p1545_p4), %v842_v22, %s2260_s12 }
 0x458   : > { %956 = vperm.xlu0 (!%p1545_p4), %1793, %v950_v36  }
 0x4bd   : > { %852 = sbr.rel (%p1545_p4) target bundleno = 1600 (0x640), region = 108 }
 0x4c2   : > { %v845_v24 = vpop.permute.xlu0 %844 }
 0x4c3   : > { %848 = vst.msk [vmem:[#allocation2] sm:$0xff] %vm847_vm4, %v845_v24 }
 0x4c6   : > { %v854_v47 = vpop.permute.xlu0 %853 }
 0x4c7   : > { %v871_v50 = vcombine.high %v854_v47, %v2265_v37  ;;  %v878_v51 = vrot.slane %v854_v47, %v2865_v43 }
 0x4c9   : > { %v885_v52 = vrot.slane %v871_v50, %v2865_v43  ;;  %v886_v53 = vcombine.low %v863_v46, %v878_v51  ;;  %v887_v54 = vcombine.high %v863_v46, %v878_v51 }
 0x4cb   : > { %v894_v55 = vrot.slane %v886_v53, %v2871_v49  ;;  %v901_v56 = vrot.slane %v887_v54, %v2871_v49  ;;  %v902_v57 = vcombine.low %v870_v48, %v885_v52  ;;  %v903_v58 = vcombine.high %v870_v48, %v885_v52 }
 0x4cd   : > { %v910_v59 = vrot.slane %v902_v57, %v2871_v49  ;;  %v917_v60 = vrot.slane %v903_v58, %v2871_v49  ;;  %v918_v5 = vcombine.high %v894_v55, %v2265_v37  ;;  %v919_v61 = vcombine.high %v901_v56, %v2265_v37 }
 0x4cf   : > { %v920_v62 = vcombine.high %v910_v59, %v2265_v37  ;;  %v921_v63 = vcombine.high %v917_v60, %v2265_v37  ;;  %v1078_v0 = vcombine.low %v894_v55, %v918_v5  ;;  %v1079_v1 = vcombine.low %v901_v56, %v919_v61 }
 0x4d1   : > { %v1095_v2 = vcombine.low %v910_v59, %v920_v62  ;;  %v1096_v3 = vcombine.low %v917_v60, %v921_v63  ;;  %v1086_v4 = vrot.slane %v1078_v0, %v2865_v43  ;;  %v1093_v7 = vrot.slane %v1079_v1, %v2865_v43 }
 0x4d3   : > { %v1103_v6 = vrot.slane %v1095_v2, %v2865_v43  ;;  %v1110_v8 = vrot.slane %v1096_v3, %v2865_v43  ;;  %v1094_v9 = vcombine.low %v1086_v4, %v1093_v7 }
 0x4d5   : > { %v1111_v10 = vcombine.low %v1103_v6, %v1110_v8 }
 0x4d7   : > { %v1575_v11 = vpack.c.bf16 %v1111_v10, %v1094_v9  ;;  %v957_v14 = vpop.permute.xlu0 %956 }
 0x4d8   : > { %v963_v17 = vcombine.high %v957_v14, %v2265_v37  ;;  %v970_v18 = vrot.slane %v957_v14, %v2865_v43 }
 0x4d9   : > { %1577 = vmatpush3.bf16.xpose.msk.msra.mxu0 %vm1576_vm7, %v1575_v11 }
 0x4da   : > { %v977_v20 = vrot.slane %v963_v17, %v2865_v43  ;;  %v993_v21 = vcombine.low %v970_v18, %v985_v16  ;;  %v994_v22 = vcombine.high %v970_v18, %v985_v16 }
 0x4dc   : > { %v1001_v23 = vrot.slane %v993_v21, %v2871_v49  ;;  %v1009_v24 = vcombine.low %v977_v20, %v992_v19  ;;  %v1010_v25 = vcombine.high %v977_v20, %v992_v19  ;;  %v1008_v26 = vrot.slane %v994_v22, %v2871_v49 }
 0x4de   : > { %1034 = vrot.lane.b32.xlu1 %v1008_v26, %s2268_s10  ;;  %v1025_v27 = vcombine.high %v1001_v23, %v2265_v37  ;;  %v1026_v28 = vcombine.high %v1008_v26, %v2265_v37  ;;  %v1017_v29 = vrot.slane %v1009_v24, %v2871_v49  ;;  %v1024_v31 = vrot.slane %v1010_v25, %v2871_v49 }
 0x4e0   : > { %1572 = vmatmul.mubr.msk.f32.vlgmr.msra.gmra.mrb[0].mxu0 %vm1059_vm6, %v922_v12  ;;  %1038 = vrot.lane.b32.xlu0 %v1026_v28, %s2269_s27  ;;  %v1027_v30 = vcombine.high %v1017_v29, %v2265_v37  ;;  %v1028_v32 = vcombine.high %v1024_v31, %v2265_v37 }
 0x4e2   : > { %1030 = vrot.lane.b32.xlu1 %v1025_v27, %s2270_s8 }
 0x4e4   : > { %1046 = vrot.lane.b32.xlu0 %v1027_v30, %s2271_s16 }
 0x4e6   : > { %1042 = vrot.lane.b32.xlu1 %v1017_v29, %s2272_s6 }
 0x4e8   : > { %1054 = vrot.lane.b32.xlu0 %v1028_v32, %s2273_s21 }
 0x4ea   : > { %1050 = vrot.lane.b32.xlu1 %v1024_v31, %s2274_s22 }
 0x550   : > { %v1035_v33 = vpop.permute.xlu1 %1034 }
 0x552   : > { %v1039_v36 = vpop.permute.xlu0 %1038 }
 0x554   : > { %v1031_v34 = vpop.permute.xlu1 %1030 }
 0x555   : > { %v1058_v35 = vsel %vm1057_vm8, %v1001_v23, %v1031_v34 }
 0x556   : > { %v1060_v38 = vsel %vm1059_vm6, %v1058_v35, %v1035_v33  ;;  %v1047_v41 = vpop.permute.xlu0 %1046 }
 0x557   : > { %v1062_v40 = vsel %vm1061_vm9, %v1060_v38, %v1039_v36 }
 0x558   : > { %v1043_v39 = vpop.permute.xlu1 %1042 }
 0x559   : > { %v1063_v37 = vsel %vm794_vm3, %v1062_v40, %v1043_v39 }
 0x55a   : > { %v1065_v44 = vsel %vm1064_vm10, %v1063_v37, %v1047_v41  ;;  %v1055_v46 = vpop.permute.xlu0 %1054 }
 0x55c   : > { %v1051_v42 = vpop.permute.xlu1 %1050 }
 0x55d   : > { %v1067_v45 = vsel %vm1066_vm11, %v1065_v44, %v1051_v42 }
 0x55e   : > { %v1069_v47 = vsel %vm1068_vm12, %v1067_v45, %v1055_v46 }
 0x5b3   : > { %v1185_v48 = vpop.f32.mrb[0].mxu0 }
 0x5b4   : > { %v1186_v50 = vadd.f32 %v1185_v48, %v1069_v47  ;;  %v1573_v51 = vpop.f32.mrb[1].mxu0 }
 0x5b6   : > { %1193 = vrot.lane.b32.xlu0 %v1186_v50, %s2260_s12  ;;  %1190 = vrot.lane.b32.xlu1 %v1186_v50, %s2275_s3 }
 0x5ba   : > { %1199 = vrot.lane.b32.xlu0 %v1186_v50, %s2276_s13  ;;  %1196 = vrot.lane.b32.xlu1 %v1186_v50, %s2277_s24 }
 0x5be   : > { %1205 = vrot.lane.b32.xlu0 %v1186_v50, %s2278_s7  ;;  %1202 = vrot.lane.b32.xlu1 %v1186_v50, %s2279_s28 }
 0x5c2   : > { %1208 = vrot.lane.b32.xlu1 %v1186_v50, %s2280_s20 }
 0x628   : > { %v1194_v52 = vpop.permute.xlu0 %1193  ;;  %v1191_v53 = vpop.permute.xlu1 %1190 }
 0x629   : > { %v1211_v59 = vcombine.low %v1186_v50, %v1194_v52 }
 0x62b   : > { %v1218_v62 = vrot.slane %v1211_v59, %v2865_v43 }
 0x62c   : > { %v1200_v54 = vpop.permute.xlu0 %1199  ;;  %v1197_v55 = vpop.permute.xlu1 %1196 }
 0x62d   : > { %v1219_v56 = vcombine.low %v1191_v53, %v1197_v55 }
 0x62f   : > { %v1226_v60 = vrot.slane %v1219_v56, %v2865_v43 }
 0x630   : > { %v1206_v57 = vpop.permute.xlu0 %1205  ;;  %v1203_v58 = vpop.permute.xlu1 %1202 }
 0x631   : > { %v1227_v5 = vcombine.low %v1200_v54, %v1206_v57  ;;  %v1243_v0 = vcombine.low %v1218_v62, %v1226_v60 }
 0x633   : > { %v1234_v1 = vrot.slane %v1227_v5, %v2865_v43  ;;  %v1250_v4 = vrot.slane %v1243_v0, %v2871_v49 }
 0x634   : > { %v1209_v61 = vpop.permute.xlu1 %1208 }
 0x635   : > { %v1235_v63 = vcombine.low %v1203_v58, %v1209_v61 }
 0x637   : > { %v1242_v2 = vrot.slane %v1235_v63, %v2865_v43 }
 0x639   : > { %v1251_v3 = vcombine.low %v1234_v1, %v1242_v2 }
 0x63b   : > { %v1258_v7 = vrot.slane %v1251_v3, %v2871_v49 }
 0x63d   : > { %v1259_v6 = vcombine.low %v1250_v4, %v1258_v7  ;;  %v1260_v8 = vcombine.high %v1250_v4, %v1258_v7 }
 0x63f   : > { %1261 = vst.msk [vmem:[%s2813_s25] sm:$0xff] %vm1057_vm8, %v1259_v6  ;;  %1262 = vst.msk [vmem:[%s2813_s25 + $0x8] sm:$0xff] %vm1057_vm8, %v1260_v8 }
 0x640 PF: > { %s3098_s26 = sld [smem:[#allocation28_spill]]  ;;  %s3099_s2 = sld [smem:[#allocation35_spill]] }
 0x641   : > { %s3100_s0 = sld [smem:[#allocation47_spill]]  ;;  %s1277_s15 = sshll.u32 %s2813_s25, 4  ;;  %s2926_s15 = int_to_ptr.vmem [resolvable:$true] %s1277_s15 }
 0x642   : > { %s1264_s9 = scalar_lea.sflag [#allocation5], %s2778_s18  ;;  %s2089_s12 = scalar_lea.vmem %s2926_s15, 256 }
 0x643   : > { %p2090_p7 = scmp.ne.s32.totalorder %s2926_s15, %s2089_s12  ;;  %s2281_s10 = smov [#allocation17]  }
 0x644   : > { %s2093_s27 = sshll.u32 %s2281_s10, 4  ;;  %s2094_s27 = int_to_ptr.vmem [resolvable:$false] %s2093_s27 }
 0x645   : > { %s2095_s8 = scalar_lea.vmem %s2094_s27, 512  ;;  %p2096_p1 = scmp.lt.s32.totalorder %s2926_s15, %s2094_s27 }
 0x646   : > { %s1555_s4 = sshll.u32 %s3098_s26, 8  ;;  %p3101_p3 = scmp.ne.s32.totalorder %s3099_s2, 0 }
 0x647   : > { %s2923_s19 = scalar_lea.hbm %s3100_s0, %s1555_s4  ;;  %p2097_p5 = scmp.lt.s32.totalorder %s2095_s8, %s2089_s12 }
 0x648   : > { %p2091_p8 = pnand %p2090_p7, %p3101_p3 }
 0x649   : > { %p2098_p2 = por %p2097_p5, %p2096_p1 }
 0x64a   : > { %p2092_p11 = pneg %p2091_p8 }
 0x64c   : > { %p2099_p0 = pnand %p2098_p2, %p2092_p11 }
 0x64e   : > { %2102 = shalt.err (!%p2099_p0)
}
 0x64f   : > { %s2103_s25 = scalar_lea.hbm %s2923_s19, 256  ;;  %s2107_s21 = scalar_lea.hbm %s3100_s0, 512 }
 0x650   : > { %p2104_p10 = scmp.ne.s32.totalorder %s2923_s19, %s2103_s25  ;;  %p2108_p9 = scmp.lt.u32.totalorder %s2923_s19, %s3100_s0 }
 0x651   : > { %p2109_p12 = scmp.lt.u32.totalorder %s2107_s21, %s2103_s25  ;;  %p2111_p7 = scmp.lt.u32.totalorder %s2103_s25, %s2923_s19 }
 0x652   : > { %p2105_p13 = pnand %p2104_p10, %p3101_p3 }
 0x653   : > { %p2110_p4 = por %p2109_p12, %p2108_p9 }
 0x654   : > { %p2106_p6 = pneg %p2105_p13 }
 0x655   : > { %p2112_p8 = por %p2111_p7, %p2110_p4 }
 0x657   : > { %p2113_p11 = pnand %p2112_p8, %p2106_p6 }
 0x659   : > { %2116 = shalt.err (!%p2113_p11)
}
 0x65a   : > { %s2282_s13 = smov 128   ;;  %s2283_s24 = smov 8  }
 0x65b   : > { %1604 = dma.vmem_to_hbm [thread:$0]  (%p3101_p3), %s2926_s15, 256, %s2923_s19, %s1264_s9, %s2282_s13, %s2282_s13, %s2283_s24  }
 0x65c PF: > { %s3102_s7 = sld [smem:[#allocation25_spill]]  ;;  %s3103_s28 = sld [smem:[#allocation36_spill]] }
 0x65d   : > { %p1649_p1 = scmp.ge.s32.totalorder %s2227_s23, 2 }
 0x662   : > { %s1292_s20 = sand.u32 1, %s3102_s7   ;;  %p3104_p5 = scmp.ne.s32.totalorder %s3103_s28, 0 }
 0x663   : > { %s1293_s26 = scalar_lea.sflag [#allocation5], %s1292_s20 }
 0x664   : > { %p1639_p2 = pnand %p1649_p1, %p3104_p5 }
 0x666   : > { %2182 = dma.done.wait (!%p1639_p2), %s1293_s26, 256  }
 0x667   : > { %2184 = vsyncadd (!%p1639_p2), %s1293_s26, 4294967040  ;;  %s28_s23 = sadd.s32 1, %s2227_s23   ;;  %s3105_s4 = sld [smem:[#allocation24_spill]] }
 0x668   : > { %p25_p0 = scmp.ge.s32.totalorder %s28_s23, 6   ;;  %s3106_s15 = sld [smem:[#allocation33_spill]] }
 0x669   : > { %s3107_s18 = sld [smem:[#allocation26_spill]]  ;;  %s3108_s2 = sld [smem:[#allocation34_spill]] }
 0x66a   : > { %s3109_s19 = sld [smem:[#allocation29_spill]]  ;;  %s3110_s20 = sld [smem:[#allocation30_spill]] }
 0x66b   : > { %s3111_s21 = sld [smem:[#allocation31_spill]]  ;;  %s3112_s22 = sld [smem:[#allocation32_spill]] }
 0x66c   : > { %s3113_s13 = smov %s2191_s14  ;;  %s3115_s16 = smov %s2203_s17 }
 0x66d   : > { %s3114_s14 = smov %s3105_s4  ;;  %27 = sbr.rel (!%p25_p0) target bundleno = 23 (0x17), region = 191 }
 0x66f   : > { %s3116_s17 = smov %s3107_s18  ;;  %s3117_s18 = smov %s3108_s2 }
 0x674   :  { %1298 = vsyncpa [#allocation4], 1 }
 0x675   :  { %1300 = vsyncpa [#allocation4 + $0x1], 1 }
 0x676   :  { %1301 = vsyncpa [#allocation7], 1 }
 0x677   :  { %1302 = vsyncpa [#allocation16], 1 }
 0x678   :  { %1303 = vsyncpa [#allocation5], 1 }
 0x679   :  { %1305 = vsyncpa [#allocation5 + $0x1], 1 }

</bundles_post_ra>
